<compile_context>
chip_gen: v6e
topology: v6e:2x2x1
jax: 0.10.0
libtpu: 0.0.40
codegen_flags: <defaults>
</compile_context>

<pallas_src>
from math import sqrt

import numpy as np
import jax
import jax.numpy as jnp
from jax import lax
from jax.experimental import pallas as pl
from jax.experimental.pallas import tpu as pltpu

SIGMA_DATA = 0.5
S_NOISE = 1.0
S_CHURN = 40.0
S_TMIN = 0.0
S_TMAX = float("inf")

# Rows of the per-step scalar table, shape (N_ROWS, S): long axis last so the
# SMEM pad is rows 14->16 / cols S->128 instead of 12->128 per row.
(NOISE_COEF, INV_SIG_HAT, COEF_EULER, INV_SIG_NEXT, COEF_HEUN,
 CIN_HAT, CSKIP_HAT, COUT_HAT, CNOISE_HAT,
 CIN_NXT, CSKIP_NXT, COUT_NXT, CNOISE_NXT, SIGMA0) = range(14)
N_ROWS = 14


# ----------------------------- Pallas kernel -------------------------------
def sampler_kernel(scal_ref, x0_ref, eps_ref, w1_ref, b1_ref, wt_ref,
                   w2_ref, b2_ref, out_ref):
    """All (num_steps-1) DiffusionSampler.step() iterations in one program."""
    n_steps = eps_ref.shape[0]                     # static

    # ---- loop-invariant loads / casts, hoisted (JAX does not CSE these) ----
    w1 = w1_ref[...].astype(jnp.bfloat16)          # (H, C)  MXU operand
    w2 = w2_ref[...].astype(jnp.bfloat16)          # (C, H)  MXU operand
    b1 = b1_ref[...]                               # (H, 1)  f32
    wt = wt_ref[...]                               # (H, 1)  f32
    b2 = b2_ref[...]                               # (C, 1)  f32

    # x = sigmas[0] * x  (reference scales before the step loop)
    x_init = x0_ref[...] * scal_ref[SIGMA0, 0]     # (C, N) f32, register carry

    def denoise(x_noisy, c_in, c_skip, c_out, c_noise):
        # net(c_in * x_noisy, c_noise): 2-layer channel-mixing MLP; the
        # noise-level conditioning is a per-step scalar FMA on a 1-vreg bias.
        bias1 = b1 + c_noise * wt                                  # (H, 1)
        x_in = (c_in * x_noisy).astype(jnp.bfloat16)               # (C, N)
        # NOTE: K=C=4 layer-1 dot is MXU-latency bound; a 4-step VPU
        # broadcast-FMA chain would avoid the MXU round-trip on the serial
        # critical path (left on MXU for simplicity).
        h = jnp.tanh(jnp.dot(w1, x_in, preferred_element_type=jnp.float32)
                     + bias1)                                      # (H, N) f32
        x_pred = jnp.dot(w2, h.astype(jnp.bfloat16),
                         preferred_element_type=jnp.float32) + b2  # (C, N) f32
        # clamp=True inside DiffusionSampler.step()
        return jnp.clip(c_skip * x_noisy + c_out * x_pred, -1.0, 1.0)

    def body(i, x):
        # per-step scalars: cheap dynamic SMEM reads
        noise_coef = scal_ref[NOISE_COEF, i]    # s_noise*sqrt(sig_hat^2-sig^2)
        inv_sig_hat = scal_ref[INV_SIG_HAT, i]
        coef_euler = scal_ref[COEF_EULER, i]    # sigma_next - sigma_hat
        inv_sig_next = scal_ref[INV_SIG_NEXT, i]  # 0 on the last step
        coef_heun = scal_ref[COEF_HEUN, i]      # 0.5*(sigma - sigma_hat);
                                                # == coef_euler on last step
        eps = eps_ref[i]                        # (C, N), resident in VMEM

        # stochastic churn:  x_hat = x + sqrt(sigma_hat^2 - sigma^2) * eps
        x_hat = x + noise_coef * eps

        den1 = denoise(x_hat, scal_ref[CIN_HAT, i], scal_ref[CSKIP_HAT, i],
                       scal_ref[COUT_HAT, i], scal_ref[CNOISE_HAT, i])
        d = (x_hat - den1) * inv_sig_hat
        x_next = x_hat + coef_euler * d

        # Heun correction, uniformized: on the last step the host sets
        # inv_sig_next = 0 (-> d_prime = 0) and coef_heun = coef_euler, so this
        # branch-free form reproduces the pure Euler result exactly.
        den2 = denoise(x_next, scal_ref[CIN_NXT, i], scal_ref[CSKIP_NXT, i],
                       scal_ref[COUT_NXT, i], scal_ref[CNOISE_NXT, i])
        d_prime = (x_next - den2) * inv_sig_next
        # NOTE: 0.5*(sigma - sigma_hat) reproduces the PyTorch reference verbatim.
        return x_hat + coef_heun * (d + d_prime)

    x_final = lax.fori_loop(0, n_steps, body, x_init, unroll=(n_steps <= 16))
    out_ref[...] = jnp.clip(x_final, -1.0, 1.0)    # final clamp, single store


def build_sampler(C, N):
    vmem = lambda: pl.BlockSpec(memory_space=pltpu.MemorySpace.VMEM)
    smem = lambda: pl.BlockSpec(memory_space=pltpu.MemorySpace.SMEM)
    return pl.pallas_call(
        sampler_kernel,
        out_shape=jax.ShapeDtypeStruct((C, N), jnp.float32),
        in_specs=[smem(),            # (N_ROWS, S) scalar table
                  vmem(),            # x0 (C, N)
                  vmem(),            # eps (S, C, N)  resident
                  vmem(), vmem(), vmem(), vmem(), vmem()],  # w1,b1,wt,w2,b2
        out_specs=vmem(),
    )


# ------------------------------- glue ---------------------------------------
def c_skip(s): return SIGMA_DATA ** 2 / (s * s + SIGMA_DATA ** 2)
def c_out(s):  return s * SIGMA_DATA / sqrt(SIGMA_DATA ** 2 + s * s)
def c_in(s):   return 1.0 / sqrt(s * s + SIGMA_DATA ** 2)
def c_noise(s): return float(np.log(s)) * 0.25


def karras_schedule(num_steps, sigma_min=0.002, sigma_max=80.0, rho=7.0):
    """num_steps sigmas, decreasing, with a trailing 0 (SigmaSchedule)."""
    i = np.arange(num_steps - 1, dtype=np.float64)
    ramp = i / max(num_steps - 2, 1)
    max_inv, min_inv = sigma_max ** (1.0 / rho), sigma_min ** (1.0 / rho)
    sig = (max_inv + ramp * (min_inv - max_inv)) ** rho
    return np.concatenate([sig, [0.0]])


def diffusion_sampler_forward(x, params, num_steps, key):
    """DiffusionSampler.forward: all steps fused into ONE pallas_call."""
    w1, b1, wt, w2, b2 = params
    B, C, T = x.shape
    H = w1.shape[0]
    N = B * T
    S = num_steps - 1

    sigmas = karras_schedule(num_steps)
    gamma_val = min(S_CHURN / num_steps, sqrt(2.0) - 1.0)
    gammas = np.where((sigmas >= S_TMIN) & (sigmas <= S_TMAX), gamma_val, 0.0)

    # host-precomputed per-step scalar table (14, S), long axis last
    scal = np.zeros((N_ROWS, S), np.float32)
    for i in range(S):
        sigma = float(sigmas[i])
        sigma_next = float(sigmas[i + 1])
        gamma = float(gammas[i])
        sigma_hat = sigma + gamma * sigma
        scal[NOISE_COEF, i] = S_NOISE * sqrt(max(sigma_hat ** 2 - sigma ** 2, 0.0))
        scal[INV_SIG_HAT, i] = 1.0 / sigma_hat
        scal[COEF_EULER, i] = sigma_next - sigma_hat
        scal[CIN_HAT, i] = c_in(sigma_hat)
        scal[CSKIP_HAT, i] = c_skip(sigma_hat)
        scal[COUT_HAT, i] = c_out(sigma_hat)
        scal[CNOISE_HAT, i] = c_noise(sigma_hat)
        if sigma_next != 0.0:
            scal[INV_SIG_NEXT, i] = 1.0 / sigma_next
            scal[COEF_HEUN, i] = 0.5 * (sigma - sigma_hat)
            scal[CIN_NXT, i] = c_in(sigma_next)
            scal[CSKIP_NXT, i] = c_skip(sigma_next)
            scal[COUT_NXT, i] = c_out(sigma_next)
            scal[CNOISE_NXT, i] = c_noise(sigma_next)
        else:
            # uniformized last step: d_prime = 0, coef_heun = coef_euler -> Euler
            scal[INV_SIG_NEXT, i] = 0.0
            scal[COEF_HEUN, i] = scal[COEF_EULER, i]
            scal[CIN_NXT, i] = c_in(0.0)        # finite dummies; the dummy
            scal[CSKIP_NXT, i] = c_skip(0.0)    # denoise result is multiplied
            scal[COUT_NXT, i] = 0.0             # by inv_sig_next == 0
            scal[CNOISE_NXT, i] = 0.0
    scal[SIGMA0, 0] = float(sigmas[0])

    # fold batch into lanes: (B, C, T) -> (C, B*T); sigmas[0] scaling is in-kernel
    x0 = x.transpose(1, 0, 2).reshape(C, N).astype(jnp.float32)
    # one RNG dispatch for all steps (torch.randn_like per step in reference);
    # resident in VMEM (S*C*N*4 B). For very large S, switch to in-kernel PRNG.
    eps_all = jax.random.normal(key, (S, C, N), jnp.float32)

    sampler = build_sampler(C, N)
    out2d = sampler(jnp.asarray(scal), x0, eps_all, w1, b1, wt, w2, b2)
    return out2d.reshape(C, B, T).transpose(1, 0, 2)


# ------------------------------- main ----------------------------------------
if __name__ == "__main__":
    B, C, T, H = 2, 4, 128, 32      # batch, channels, time, hidden
    NUM_STEPS = 5

    key = jax.random.PRNGKey(0)
    kx, kw1, kb1, kwt, kw2, kb2, ksamp = jax.random.split(key, 7)

    # deterministic synthetic net parameters
    w1 = jax.random.normal(kw1, (H, C), jnp.float32) / np.sqrt(C)
    b1 = jax.random.normal(kb1, (H, 1), jnp.float32) * 0.1
    wt = jax.random.normal(kwt, (H, 1), jnp.float32) * 0.1
    w2 = jax.random.normal(kw2, (C, H), jnp.float32) / np.sqrt(H)
    b2 = jax.random.normal(kb2, (C, 1), jnp.float32) * 0.1
    params = (w1, b1, wt, w2, b2)

    # input latent/noise (the sampler scales it by sigmas[0] itself)
    x0 = jax.random.normal(kx, (B, C, T), jnp.float32)

    out = diffusion_sampler_forward(x0, params, NUM_STEPS, ksamp)
    out = jax.block_until_ready(out)

    assert out.shape == (B, C, T)
    assert bool(jnp.all(jnp.isfinite(out)))
    assert bool(jnp.all(out <= 1.0)) and bool(jnp.all(out >= -1.0))
    print("KERNEL_OK")
</pallas_src>

<mosaic_0001>
module attributes {stable_mosaic.version = 11 : i64} {
  func.func @sampler_kernel(%arg0: memref<14x4xf32, #tpu.memory_space<smem>>, %arg1: memref<4x256xf32, #tpu.memory_space<vmem>>, %arg2: memref<4x4x256xf32, #tpu.memory_space<vmem>>, %arg3: memref<32x4xf32, #tpu.memory_space<vmem>>, %arg4: memref<32x1xf32, #tpu.memory_space<vmem>>, %arg5: memref<32x1xf32, #tpu.memory_space<vmem>>, %arg6: memref<4x32xf32, #tpu.memory_space<vmem>>, %arg7: memref<4x1xf32, #tpu.memory_space<vmem>>, %arg8: memref<4x256xf32, #tpu.memory_space<vmem>>) attributes {dimension_semantics = [], scalar_prefetch = 0 : i64, scratch_operands = 0 : i64, tpu.core_type = #tpu.core_type<tc>} {
    %c0 = arith.constant 0 : index
    %c0_0 = arith.constant 0 : index
    %0 = vector.load %arg3[%c0, %c0_0] : memref<32x4xf32, #tpu.memory_space<vmem>>, vector<32x4xf32>
    %1 = arith.truncf %0 : vector<32x4xf32> to vector<32x4xbf16>
    %c0_1 = arith.constant 0 : index
    %c0_2 = arith.constant 0 : index
    %2 = vector.load %arg6[%c0_1, %c0_2] : memref<4x32xf32, #tpu.memory_space<vmem>>, vector<4x32xf32>
    %3 = arith.truncf %2 : vector<4x32xf32> to vector<4x32xbf16>
    %c0_3 = arith.constant 0 : index
    %c0_4 = arith.constant 0 : index
    %4 = vector.load %arg4[%c0_3, %c0_4] : memref<32x1xf32, #tpu.memory_space<vmem>>, vector<32x1xf32>
    %c0_5 = arith.constant 0 : index
    %c0_6 = arith.constant 0 : index
    %5 = vector.load %arg5[%c0_5, %c0_6] : memref<32x1xf32, #tpu.memory_space<vmem>>, vector<32x1xf32>
    %c0_7 = arith.constant 0 : index
    %c0_8 = arith.constant 0 : index
    %6 = vector.load %arg7[%c0_7, %c0_8] : memref<4x1xf32, #tpu.memory_space<vmem>>, vector<4x1xf32>
    %c0_9 = arith.constant 0 : index
    %c0_10 = arith.constant 0 : index
    %7 = vector.load %arg1[%c0_9, %c0_10] : memref<4x256xf32, #tpu.memory_space<vmem>>, vector<4x256xf32>
    %c13 = arith.constant 13 : index
    %c0_11 = arith.constant 0 : index
    %8 = memref.load %arg0[%c13, %c0_11] : memref<14x4xf32, #tpu.memory_space<smem>>
    %9 = vector.broadcast %8 : f32 to vector<4x256xf32>
    %10 = arith.mulf %7, %9 : vector<4x256xf32>
    %c0_i32 = arith.constant 0 : i32
    %c0_12 = arith.constant 0 : index
    %11 = arith.index_cast %c0_i32 : i32 to index
    %12 = memref.load %arg0[%c0_12, %11] : memref<14x4xf32, #tpu.memory_space<smem>>
    %c1 = arith.constant 1 : index
    %13 = arith.index_cast %c0_i32 : i32 to index
    %14 = memref.load %arg0[%c1, %13] : memref<14x4xf32, #tpu.memory_space<smem>>
    %c2 = arith.constant 2 : index
    %15 = arith.index_cast %c0_i32 : i32 to index
    %16 = memref.load %arg0[%c2, %15] : memref<14x4xf32, #tpu.memory_space<smem>>
    %c3 = arith.constant 3 : index
    %17 = arith.index_cast %c0_i32 : i32 to index
    %18 = memref.load %arg0[%c3, %17] : memref<14x4xf32, #tpu.memory_space<smem>>
    %c4 = arith.constant 4 : index
    %19 = arith.index_cast %c0_i32 : i32 to index
    %20 = memref.load %arg0[%c4, %19] : memref<14x4xf32, #tpu.memory_space<smem>>
    %21 = arith.index_cast %c0_i32 : i32 to index
    %c0_13 = arith.constant 0 : index
    %c0_14 = arith.constant 0 : index
    %22 = vector.load %arg2[%21, %c0_13, %c0_14] : memref<4x4x256xf32, #tpu.memory_space<vmem>>, vector<1x4x256xf32>
    %23 = vector.shape_cast %22 : vector<1x4x256xf32> to vector<4x256xf32>
    %24 = vector.broadcast %12 : f32 to vector<4x256xf32>
    %25 = arith.mulf %24, %23 : vector<4x256xf32>
    %26 = arith.addf %10, %25 : vector<4x256xf32>
    %c5 = arith.constant 5 : index
    %27 = arith.index_cast %c0_i32 : i32 to index
    %28 = memref.load %arg0[%c5, %27] : memref<14x4xf32, #tpu.memory_space<smem>>
    %c6 = arith.constant 6 : index
    %29 = arith.index_cast %c0_i32 : i32 to index
    %30 = memref.load %arg0[%c6, %29] : memref<14x4xf32, #tpu.memory_space<smem>>
    %c7 = arith.constant 7 : index
    %31 = arith.index_cast %c0_i32 : i32 to index
    %32 = memref.load %arg0[%c7, %31] : memref<14x4xf32, #tpu.memory_space<smem>>
    %c8 = arith.constant 8 : index
    %33 = arith.index_cast %c0_i32 : i32 to index
    %34 = memref.load %arg0[%c8, %33] : memref<14x4xf32, #tpu.memory_space<smem>>
    %35 = vector.broadcast %34 : f32 to vector<32x1xf32>
    %36 = arith.mulf %35, %5 : vector<32x1xf32>
    %37 = arith.addf %4, %36 : vector<32x1xf32>
    %38 = vector.broadcast %28 : f32 to vector<4x256xf32>
    %39 = arith.mulf %38, %26 : vector<4x256xf32>
    %40 = arith.truncf %39 : vector<4x256xf32> to vector<4x256xbf16>
    %cst = arith.constant dense<0.000000e+00> : vector<32x256xf32>
    %41 = tpu.matmul %1, %40, %cst {dimension_numbers = #tpu.dot_dimension_numbers<[1], [0], [0], [1], [0, 0, 1, 1], [], []>} : vector<32x4xbf16>, vector<4x256xbf16>, vector<32x256xf32> -> vector<32x256xf32>
    %42 = vector.broadcast %37 : vector<32x1xf32> to vector<32x256xf32>
    %43 = arith.addf %41, %42 : vector<32x256xf32>
    %44 = math.tanh %43 : vector<32x256xf32>
    %45 = arith.truncf %44 : vector<32x256xf32> to vector<32x256xbf16>
    %cst_15 = arith.constant dense<0.000000e+00> : vector<4x256xf32>
    %46 = tpu.matmul %3, %45, %cst_15 {dimension_numbers = #tpu.dot_dimension_numbers<[1], [0], [0], [1], [0, 0, 1, 1], [], []>} : vector<4x32xbf16>, vector<32x256xbf16>, vector<4x256xf32> -> vector<4x256xf32>
    %47 = vector.broadcast %6 : vector<4x1xf32> to vector<4x256xf32>
    %48 = arith.addf %46, %47 : vector<4x256xf32>
    %49 = vector.broadcast %30 : f32 to vector<4x256xf32>
    %50 = arith.mulf %49, %26 : vector<4x256xf32>
    %51 = vector.broadcast %32 : f32 to vector<4x256xf32>
    %52 = arith.mulf %51, %48 : vector<4x256xf32>
    %53 = arith.addf %50, %52 : vector<4x256xf32>
    %cst_16 = arith.constant -1.000000e+00 : f32
    %cst_17 = arith.constant 1.000000e+00 : f32
    %54 = vector.broadcast %cst_16 : f32 to vector<4x256xf32>
    %55 = arith.maximumf %54, %53 : vector<4x256xf32>
    %56 = vector.broadcast %cst_17 : f32 to vector<4x256xf32>
    %57 = arith.minimumf %56, %55 : vector<4x256xf32>
    %58 = arith.subf %26, %57 : vector<4x256xf32>
    %59 = vector.broadcast %14 : f32 to vector<4x256xf32>
    %60 = arith.mulf %58, %59 : vector<4x256xf32>
    %61 = vector.broadcast %16 : f32 to vector<4x256xf32>
    %62 = arith.mulf %61, %60 : vector<4x256xf32>
    %63 = arith.addf %26, %62 : vector<4x256xf32>
    %c9 = arith.constant 9 : index
    %64 = arith.index_cast %c0_i32 : i32 to index
    %65 = memref.load %arg0[%c9, %64] : memref<14x4xf32, #tpu.memory_space<smem>>
    %c10 = arith.constant 10 : index
    %66 = arith.index_cast %c0_i32 : i32 to index
    %67 = memref.load %arg0[%c10, %66] : memref<14x4xf32, #tpu.memory_space<smem>>
    %c11 = arith.constant 11 : index
    %68 = arith.index_cast %c0_i32 : i32 to index
    %69 = memref.load %arg0[%c11, %68] : memref<14x4xf32, #tpu.memory_space<smem>>
    %c12 = arith.constant 12 : index
    %70 = arith.index_cast %c0_i32 : i32 to index
    %71 = memref.load %arg0[%c12, %70] : memref<14x4xf32, #tpu.memory_space<smem>>
    %72 = vector.broadcast %71 : f32 to vector<32x1xf32>
    %73 = arith.mulf %72, %5 : vector<32x1xf32>
    %74 = arith.addf %4, %73 : vector<32x1xf32>
    %75 = vector.broadcast %65 : f32 to vector<4x256xf32>
    %76 = arith.mulf %75, %63 : vector<4x256xf32>
    %77 = arith.truncf %76 : vector<4x256xf32> to vector<4x256xbf16>
    %cst_18 = arith.constant dense<0.000000e+00> : vector<32x256xf32>
    %78 = tpu.matmul %1, %77, %cst_18 {dimension_numbers = #tpu.dot_dimension_numbers<[1], [0], [0], [1], [0, 0, 1, 1], [], []>} : vector<32x4xbf16>, vector<4x256xbf16>, vector<32x256xf32> -> vector<32x256xf32>
    %79 = vector.broadcast %74 : vector<32x1xf32> to vector<32x256xf32>
    %80 = arith.addf %78, %79 : vector<32x256xf32>
    %81 = math.tanh %80 : vector<32x256xf32>
    %82 = arith.truncf %81 : vector<32x256xf32> to vector<32x256xbf16>
    %cst_19 = arith.constant dense<0.000000e+00> : vector<4x256xf32>
    %83 = tpu.matmul %3, %82, %cst_19 {dimension_numbers = #tpu.dot_dimension_numbers<[1], [0], [0], [1], [0, 0, 1, 1], [], []>} : vector<4x32xbf16>, vector<32x256xbf16>, vector<4x256xf32> -> vector<4x256xf32>
    %84 = vector.broadcast %6 : vector<4x1xf32> to vector<4x256xf32>
    %85 = arith.addf %83, %84 : vector<4x256xf32>
    %86 = vector.broadcast %67 : f32 to vector<4x256xf32>
    %87 = arith.mulf %86, %63 : vector<4x256xf32>
    %88 = vector.broadcast %69 : f32 to vector<4x256xf32>
    %89 = arith.mulf %88, %85 : vector<4x256xf32>
    %90 = arith.addf %87, %89 : vector<4x256xf32>
    %cst_20 = arith.constant -1.000000e+00 : f32
    %cst_21 = arith.constant 1.000000e+00 : f32
    %91 = vector.broadcast %cst_20 : f32 to vector<4x256xf32>
    %92 = arith.maximumf %91, %90 : vector<4x256xf32>
    %93 = vector.broadcast %cst_21 : f32 to vector<4x256xf32>
    %94 = arith.minimumf %93, %92 : vector<4x256xf32>
    %95 = arith.subf %63, %94 : vector<4x256xf32>
    %96 = vector.broadcast %18 : f32 to vector<4x256xf32>
    %97 = arith.mulf %95, %96 : vector<4x256xf32>
    %98 = arith.addf %60, %97 : vector<4x256xf32>
    %99 = vector.broadcast %20 : f32 to vector<4x256xf32>
    %100 = arith.mulf %99, %98 : vector<4x256xf32>
    %101 = arith.addf %26, %100 : vector<4x256xf32>
    %c1_i32 = arith.constant 1 : i32
    %c0_22 = arith.constant 0 : index
    %102 = arith.index_cast %c1_i32 : i32 to index
    %103 = memref.load %arg0[%c0_22, %102] : memref<14x4xf32, #tpu.memory_space<smem>>
    %c1_23 = arith.constant 1 : index
    %104 = arith.index_cast %c1_i32 : i32 to index
    %105 = memref.load %arg0[%c1_23, %104] : memref<14x4xf32, #tpu.memory_space<smem>>
    %c2_24 = arith.constant 2 : index
    %106 = arith.index_cast %c1_i32 : i32 to index
    %107 = memref.load %arg0[%c2_24, %106] : memref<14x4xf32, #tpu.memory_space<smem>>
    %c3_25 = arith.constant 3 : index
    %108 = arith.index_cast %c1_i32 : i32 to index
    %109 = memref.load %arg0[%c3_25, %108] : memref<14x4xf32, #tpu.memory_space<smem>>
    %c4_26 = arith.constant 4 : index
    %110 = arith.index_cast %c1_i32 : i32 to index
    %111 = memref.load %arg0[%c4_26, %110] : memref<14x4xf32, #tpu.memory_space<smem>>
    %112 = arith.index_cast %c1_i32 : i32 to index
    %c0_27 = arith.constant 0 : index
    %c0_28 = arith.constant 0 : index
    %113 = vector.load %arg2[%112, %c0_27, %c0_28] : memref<4x4x256xf32, #tpu.memory_space<vmem>>, vector<1x4x256xf32>
    %114 = vector.shape_cast %113 : vector<1x4x256xf32> to vector<4x256xf32>
    %115 = vector.broadcast %103 : f32 to vector<4x256xf32>
    %116 = arith.mulf %115, %114 : vector<4x256xf32>
    %117 = arith.addf %101, %116 : vector<4x256xf32>
    %c5_29 = arith.constant 5 : index
    %118 = arith.index_cast %c1_i32 : i32 to index
    %119 = memref.load %arg0[%c5_29, %118] : memref<14x4xf32, #tpu.memory_space<smem>>
    %c6_30 = arith.constant 6 : index
    %120 = arith.index_cast %c1_i32 : i32 to index
    %121 = memref.load %arg0[%c6_30, %120] : memref<14x4xf32, #tpu.memory_space<smem>>
    %c7_31 = arith.constant 7 : index
    %122 = arith.index_cast %c1_i32 : i32 to index
    %123 = memref.load %arg0[%c7_31, %122] : memref<14x4xf32, #tpu.memory_space<smem>>
    %c8_32 = arith.constant 8 : index
    %124 = arith.index_cast %c1_i32 : i32 to index
    %125 = memref.load %arg0[%c8_32, %124] : memref<14x4xf32, #tpu.memory_space<smem>>
    %126 = vector.broadcast %125 : f32 to vector<32x1xf32>
    %127 = arith.mulf %126, %5 : vector<32x1xf32>
    %128 = arith.addf %4, %127 : vector<32x1xf32>
    %129 = vector.broadcast %119 : f32 to vector<4x256xf32>
    %130 = arith.mulf %129, %117 : vector<4x256xf32>
    %131 = arith.truncf %130 : vector<4x256xf32> to vector<4x256xbf16>
    %cst_33 = arith.constant dense<0.000000e+00> : vector<32x256xf32>
    %132 = tpu.matmul %1, %131, %cst_33 {dimension_numbers = #tpu.dot_dimension_numbers<[1], [0], [0], [1], [0, 0, 1, 1], [], []>} : vector<32x4xbf16>, vector<4x256xbf16>, vector<32x256xf32> -> vector<32x256xf32>
    %133 = vector.broadcast %128 : vector<32x1xf32> to vector<32x256xf32>
    %134 = arith.addf %132, %133 : vector<32x256xf32>
    %135 = math.tanh %134 : vector<32x256xf32>
    %136 = arith.truncf %135 : vector<32x256xf32> to vector<32x256xbf16>
    %cst_34 = arith.constant dense<0.000000e+00> : vector<4x256xf32>
    %137 = tpu.matmul %3, %136, %cst_34 {dimension_numbers = #tpu.dot_dimension_numbers<[1], [0], [0], [1], [0, 0, 1, 1], [], []>} : vector<4x32xbf16>, vector<32x256xbf16>, vector<4x256xf32> -> vector<4x256xf32>
    %138 = vector.broadcast %6 : vector<4x1xf32> to vector<4x256xf32>
    %139 = arith.addf %137, %138 : vector<4x256xf32>
    %140 = vector.broadcast %121 : f32 to vector<4x256xf32>
    %141 = arith.mulf %140, %117 : vector<4x256xf32>
    %142 = vector.broadcast %123 : f32 to vector<4x256xf32>
    %143 = arith.mulf %142, %139 : vector<4x256xf32>
    %144 = arith.addf %141, %143 : vector<4x256xf32>
    %cst_35 = arith.constant -1.000000e+00 : f32
    %cst_36 = arith.constant 1.000000e+00 : f32
    %145 = vector.broadcast %cst_35 : f32 to vector<4x256xf32>
    %146 = arith.maximumf %145, %144 : vector<4x256xf32>
    %147 = vector.broadcast %cst_36 : f32 to vector<4x256xf32>
    %148 = arith.minimumf %147, %146 : vector<4x256xf32>
    %149 = arith.subf %117, %148 : vector<4x256xf32>
    %150 = vector.broadcast %105 : f32 to vector<4x256xf32>
    %151 = arith.mulf %149, %150 : vector<4x256xf32>
    %152 = vector.broadcast %107 : f32 to vector<4x256xf32>
    %153 = arith.mulf %152, %151 : vector<4x256xf32>
    %154 = arith.addf %117, %153 : vector<4x256xf32>
    %c9_37 = arith.constant 9 : index
    %155 = arith.index_cast %c1_i32 : i32 to index
    %156 = memref.load %arg0[%c9_37, %155] : memref<14x4xf32, #tpu.memory_space<smem>>
    %c10_38 = arith.constant 10 : index
    %157 = arith.index_cast %c1_i32 : i32 to index
    %158 = memref.load %arg0[%c10_38, %157] : memref<14x4xf32, #tpu.memory_space<smem>>
    %c11_39 = arith.constant 11 : index
    %159 = arith.index_cast %c1_i32 : i32 to index
    %160 = memref.load %arg0[%c11_39, %159] : memref<14x4xf32, #tpu.memory_space<smem>>
    %c12_40 = arith.constant 12 : index
    %161 = arith.index_cast %c1_i32 : i32 to index
    %162 = memref.load %arg0[%c12_40, %161] : memref<14x4xf32, #tpu.memory_space<smem>>
    %163 = vector.broadcast %162 : f32 to vector<32x1xf32>
    %164 = arith.mulf %163, %5 : vector<32x1xf32>
    %165 = arith.addf %4, %164 : vector<32x1xf32>
    %166 = vector.broadcast %156 : f32 to vector<4x256xf32>
    %167 = arith.mulf %166, %154 : vector<4x256xf32>
    %168 = arith.truncf %167 : vector<4x256xf32> to vector<4x256xbf16>
    %cst_41 = arith.constant dense<0.000000e+00> : vector<32x256xf32>
    %169 = tpu.matmul %1, %168, %cst_41 {dimension_numbers = #tpu.dot_dimension_numbers<[1], [0], [0], [1], [0, 0, 1, 1], [], []>} : vector<32x4xbf16>, vector<4x256xbf16>, vector<32x256xf32> -> vector<32x256xf32>
    %170 = vector.broadcast %165 : vector<32x1xf32> to vector<32x256xf32>
    %171 = arith.addf %169, %170 : vector<32x256xf32>
    %172 = math.tanh %171 : vector<32x256xf32>
    %173 = arith.truncf %172 : vector<32x256xf32> to vector<32x256xbf16>
    %cst_42 = arith.constant dense<0.000000e+00> : vector<4x256xf32>
    %174 = tpu.matmul %3, %173, %cst_42 {dimension_numbers = #tpu.dot_dimension_numbers<[1], [0], [0], [1], [0, 0, 1, 1], [], []>} : vector<4x32xbf16>, vector<32x256xbf16>, vector<4x256xf32> -> vector<4x256xf32>
    %175 = vector.broadcast %6 : vector<4x1xf32> to vector<4x256xf32>
    %176 = arith.addf %174, %175 : vector<4x256xf32>
    %177 = vector.broadcast %158 : f32 to vector<4x256xf32>
    %178 = arith.mulf %177, %154 : vector<4x256xf32>
    %179 = vector.broadcast %160 : f32 to vector<4x256xf32>
    %180 = arith.mulf %179, %176 : vector<4x256xf32>
    %181 = arith.addf %178, %180 : vector<4x256xf32>
    %cst_43 = arith.constant -1.000000e+00 : f32
    %cst_44 = arith.constant 1.000000e+00 : f32
    %182 = vector.broadcast %cst_43 : f32 to vector<4x256xf32>
    %183 = arith.maximumf %182, %181 : vector<4x256xf32>
    %184 = vector.broadcast %cst_44 : f32 to vector<4x256xf32>
    %185 = arith.minimumf %184, %183 : vector<4x256xf32>
    %186 = arith.subf %154, %185 : vector<4x256xf32>
    %187 = vector.broadcast %109 : f32 to vector<4x256xf32>
    %188 = arith.mulf %186, %187 : vector<4x256xf32>
    %189 = arith.addf %151, %188 : vector<4x256xf32>
    %190 = vector.broadcast %111 : f32 to vector<4x256xf32>
    %191 = arith.mulf %190, %189 : vector<4x256xf32>
    %192 = arith.addf %117, %191 : vector<4x256xf32>
    %c2_i32 = arith.constant 2 : i32
    %c0_45 = arith.constant 0 : index
    %193 = arith.index_cast %c2_i32 : i32 to index
    %194 = memref.load %arg0[%c0_45, %193] : memref<14x4xf32, #tpu.memory_space<smem>>
    %c1_46 = arith.constant 1 : index
    %195 = arith.index_cast %c2_i32 : i32 to index
    %196 = memref.load %arg0[%c1_46, %195] : memref<14x4xf32, #tpu.memory_space<smem>>
    %c2_47 = arith.constant 2 : index
    %197 = arith.index_cast %c2_i32 : i32 to index
    %198 = memref.load %arg0[%c2_47, %197] : memref<14x4xf32, #tpu.memory_space<smem>>
    %c3_48 = arith.constant 3 : index
    %199 = arith.index_cast %c2_i32 : i32 to index
    %200 = memref.load %arg0[%c3_48, %199] : memref<14x4xf32, #tpu.memory_space<smem>>
    %c4_49 = arith.constant 4 : index
    %201 = arith.index_cast %c2_i32 : i32 to index
    %202 = memref.load %arg0[%c4_49, %201] : memref<14x4xf32, #tpu.memory_space<smem>>
    %203 = arith.index_cast %c2_i32 : i32 to index
    %c0_50 = arith.constant 0 : index
    %c0_51 = arith.constant 0 : index
    %204 = vector.load %arg2[%203, %c0_50, %c0_51] : memref<4x4x256xf32, #tpu.memory_space<vmem>>, vector<1x4x256xf32>
    %205 = vector.shape_cast %204 : vector<1x4x256xf32> to vector<4x256xf32>
    %206 = vector.broadcast %194 : f32 to vector<4x256xf32>
    %207 = arith.mulf %206, %205 : vector<4x256xf32>
    %208 = arith.addf %192, %207 : vector<4x256xf32>
    %c5_52 = arith.constant 5 : index
    %209 = arith.index_cast %c2_i32 : i32 to index
    %210 = memref.load %arg0[%c5_52, %209] : memref<14x4xf32, #tpu.memory_space<smem>>
    %c6_53 = arith.constant 6 : index
    %211 = arith.index_cast %c2_i32 : i32 to index
    %212 = memref.load %arg0[%c6_53, %211] : memref<14x4xf32, #tpu.memory_space<smem>>
    %c7_54 = arith.constant 7 : index
    %213 = arith.index_cast %c2_i32 : i32 to index
    %214 = memref.load %arg0[%c7_54, %213] : memref<14x4xf32, #tpu.memory_space<smem>>
    %c8_55 = arith.constant 8 : index
    %215 = arith.index_cast %c2_i32 : i32 to index
    %216 = memref.load %arg0[%c8_55, %215] : memref<14x4xf32, #tpu.memory_space<smem>>
    %217 = vector.broadcast %216 : f32 to vector<32x1xf32>
    %218 = arith.mulf %217, %5 : vector<32x1xf32>
    %219 = arith.addf %4, %218 : vector<32x1xf32>
    %220 = vector.broadcast %210 : f32 to vector<4x256xf32>
    %221 = arith.mulf %220, %208 : vector<4x256xf32>
    %222 = arith.truncf %221 : vector<4x256xf32> to vector<4x256xbf16>
    %cst_56 = arith.constant dense<0.000000e+00> : vector<32x256xf32>
    %223 = tpu.matmul %1, %222, %cst_56 {dimension_numbers = #tpu.dot_dimension_numbers<[1], [0], [0], [1], [0, 0, 1, 1], [], []>} : vector<32x4xbf16>, vector<4x256xbf16>, vector<32x256xf32> -> vector<32x256xf32>
    %224 = vector.broadcast %219 : vector<32x1xf32> to vector<32x256xf32>
    %225 = arith.addf %223, %224 : vector<32x256xf32>
    %226 = math.tanh %225 : vector<32x256xf32>
    %227 = arith.truncf %226 : vector<32x256xf32> to vector<32x256xbf16>
    %cst_57 = arith.constant dense<0.000000e+00> : vector<4x256xf32>
    %228 = tpu.matmul %3, %227, %cst_57 {dimension_numbers = #tpu.dot_dimension_numbers<[1], [0], [0], [1], [0, 0, 1, 1], [], []>} : vector<4x32xbf16>, vector<32x256xbf16>, vector<4x256xf32> -> vector<4x256xf32>
    %229 = vector.broadcast %6 : vector<4x1xf32> to vector<4x256xf32>
    %230 = arith.addf %228, %229 : vector<4x256xf32>
    %231 = vector.broadcast %212 : f32 to vector<4x256xf32>
    %232 = arith.mulf %231, %208 : vector<4x256xf32>
    %233 = vector.broadcast %214 : f32 to vector<4x256xf32>
    %234 = arith.mulf %233, %230 : vector<4x256xf32>
    %235 = arith.addf %232, %234 : vector<4x256xf32>
    %cst_58 = arith.constant -1.000000e+00 : f32
    %cst_59 = arith.constant 1.000000e+00 : f32
    %236 = vector.broadcast %cst_58 : f32 to vector<4x256xf32>
    %237 = arith.maximumf %236, %235 : vector<4x256xf32>
    %238 = vector.broadcast %cst_59 : f32 to vector<4x256xf32>
    %239 = arith.minimumf %238, %237 : vector<4x256xf32>
    %240 = arith.subf %208, %239 : vector<4x256xf32>
    %241 = vector.broadcast %196 : f32 to vector<4x256xf32>
    %242 = arith.mulf %240, %241 : vector<4x256xf32>
    %243 = vector.broadcast %198 : f32 to vector<4x256xf32>
    %244 = arith.mulf %243, %242 : vector<4x256xf32>
    %245 = arith.addf %208, %244 : vector<4x256xf32>
    %c9_60 = arith.constant 9 : index
    %246 = arith.index_cast %c2_i32 : i32 to index
    %247 = memref.load %arg0[%c9_60, %246] : memref<14x4xf32, #tpu.memory_space<smem>>
    %c10_61 = arith.constant 10 : index
    %248 = arith.index_cast %c2_i32 : i32 to index
    %249 = memref.load %arg0[%c10_61, %248] : memref<14x4xf32, #tpu.memory_space<smem>>
    %c11_62 = arith.constant 11 : index
    %250 = arith.index_cast %c2_i32 : i32 to index
    %251 = memref.load %arg0[%c11_62, %250] : memref<14x4xf32, #tpu.memory_space<smem>>
    %c12_63 = arith.constant 12 : index
    %252 = arith.index_cast %c2_i32 : i32 to index
    %253 = memref.load %arg0[%c12_63, %252] : memref<14x4xf32, #tpu.memory_space<smem>>
    %254 = vector.broadcast %253 : f32 to vector<32x1xf32>
    %255 = arith.mulf %254, %5 : vector<32x1xf32>
    %256 = arith.addf %4, %255 : vector<32x1xf32>
    %257 = vector.broadcast %247 : f32 to vector<4x256xf32>
    %258 = arith.mulf %257, %245 : vector<4x256xf32>
    %259 = arith.truncf %258 : vector<4x256xf32> to vector<4x256xbf16>
    %cst_64 = arith.constant dense<0.000000e+00> : vector<32x256xf32>
    %260 = tpu.matmul %1, %259, %cst_64 {dimension_numbers = #tpu.dot_dimension_numbers<[1], [0], [0], [1], [0, 0, 1, 1], [], []>} : vector<32x4xbf16>, vector<4x256xbf16>, vector<32x256xf32> -> vector<32x256xf32>
    %261 = vector.broadcast %256 : vector<32x1xf32> to vector<32x256xf32>
    %262 = arith.addf %260, %261 : vector<32x256xf32>
    %263 = math.tanh %262 : vector<32x256xf32>
    %264 = arith.truncf %263 : vector<32x256xf32> to vector<32x256xbf16>
    %cst_65 = arith.constant dense<0.000000e+00> : vector<4x256xf32>
    %265 = tpu.matmul %3, %264, %cst_65 {dimension_numbers = #tpu.dot_dimension_numbers<[1], [0], [0], [1], [0, 0, 1, 1], [], []>} : vector<4x32xbf16>, vector<32x256xbf16>, vector<4x256xf32> -> vector<4x256xf32>
    %266 = vector.broadcast %6 : vector<4x1xf32> to vector<4x256xf32>
    %267 = arith.addf %265, %266 : vector<4x256xf32>
    %268 = vector.broadcast %249 : f32 to vector<4x256xf32>
    %269 = arith.mulf %268, %245 : vector<4x256xf32>
    %270 = vector.broadcast %251 : f32 to vector<4x256xf32>
    %271 = arith.mulf %270, %267 : vector<4x256xf32>
    %272 = arith.addf %269, %271 : vector<4x256xf32>
    %cst_66 = arith.constant -1.000000e+00 : f32
    %cst_67 = arith.constant 1.000000e+00 : f32
    %273 = vector.broadcast %cst_66 : f32 to vector<4x256xf32>
    %274 = arith.maximumf %273, %272 : vector<4x256xf32>
    %275 = vector.broadcast %cst_67 : f32 to vector<4x256xf32>
    %276 = arith.minimumf %275, %274 : vector<4x256xf32>
    %277 = arith.subf %245, %276 : vector<4x256xf32>
    %278 = vector.broadcast %200 : f32 to vector<4x256xf32>
    %279 = arith.mulf %277, %278 : vector<4x256xf32>
    %280 = arith.addf %242, %279 : vector<4x256xf32>
    %281 = vector.broadcast %202 : f32 to vector<4x256xf32>
    %282 = arith.mulf %281, %280 : vector<4x256xf32>
    %283 = arith.addf %208, %282 : vector<4x256xf32>
    %c3_i32 = arith.constant 3 : i32
    %c0_68 = arith.constant 0 : index
    %284 = arith.index_cast %c3_i32 : i32 to index
    %285 = memref.load %arg0[%c0_68, %284] : memref<14x4xf32, #tpu.memory_space<smem>>
    %c1_69 = arith.constant 1 : index
    %286 = arith.index_cast %c3_i32 : i32 to index
    %287 = memref.load %arg0[%c1_69, %286] : memref<14x4xf32, #tpu.memory_space<smem>>
    %c2_70 = arith.constant 2 : index
    %288 = arith.index_cast %c3_i32 : i32 to index
    %289 = memref.load %arg0[%c2_70, %288] : memref<14x4xf32, #tpu.memory_space<smem>>
    %c3_71 = arith.constant 3 : index
    %290 = arith.index_cast %c3_i32 : i32 to index
    %291 = memref.load %arg0[%c3_71, %290] : memref<14x4xf32, #tpu.memory_space<smem>>
    %c4_72 = arith.constant 4 : index
    %292 = arith.index_cast %c3_i32 : i32 to index
    %293 = memref.load %arg0[%c4_72, %292] : memref<14x4xf32, #tpu.memory_space<smem>>
    %294 = arith.index_cast %c3_i32 : i32 to index
    %c0_73 = arith.constant 0 : index
    %c0_74 = arith.constant 0 : index
    %295 = vector.load %arg2[%294, %c0_73, %c0_74] : memref<4x4x256xf32, #tpu.memory_space<vmem>>, vector<1x4x256xf32>
    %296 = vector.shape_cast %295 : vector<1x4x256xf32> to vector<4x256xf32>
    %297 = vector.broadcast %285 : f32 to vector<4x256xf32>
    %298 = arith.mulf %297, %296 : vector<4x256xf32>
    %299 = arith.addf %283, %298 : vector<4x256xf32>
    %c5_75 = arith.constant 5 : index
    %300 = arith.index_cast %c3_i32 : i32 to index
    %301 = memref.load %arg0[%c5_75, %300] : memref<14x4xf32, #tpu.memory_space<smem>>
    %c6_76 = arith.constant 6 : index
    %302 = arith.index_cast %c3_i32 : i32 to index
    %303 = memref.load %arg0[%c6_76, %302] : memref<14x4xf32, #tpu.memory_space<smem>>
    %c7_77 = arith.constant 7 : index
    %304 = arith.index_cast %c3_i32 : i32 to index
    %305 = memref.load %arg0[%c7_77, %304] : memref<14x4xf32, #tpu.memory_space<smem>>
    %c8_78 = arith.constant 8 : index
    %306 = arith.index_cast %c3_i32 : i32 to index
    %307 = memref.load %arg0[%c8_78, %306] : memref<14x4xf32, #tpu.memory_space<smem>>
    %308 = vector.broadcast %307 : f32 to vector<32x1xf32>
    %309 = arith.mulf %308, %5 : vector<32x1xf32>
    %310 = arith.addf %4, %309 : vector<32x1xf32>
    %311 = vector.broadcast %301 : f32 to vector<4x256xf32>
    %312 = arith.mulf %311, %299 : vector<4x256xf32>
    %313 = arith.truncf %312 : vector<4x256xf32> to vector<4x256xbf16>
    %cst_79 = arith.constant dense<0.000000e+00> : vector<32x256xf32>
    %314 = tpu.matmul %1, %313, %cst_79 {dimension_numbers = #tpu.dot_dimension_numbers<[1], [0], [0], [1], [0, 0, 1, 1], [], []>} : vector<32x4xbf16>, vector<4x256xbf16>, vector<32x256xf32> -> vector<32x256xf32>
    %315 = vector.broadcast %310 : vector<32x1xf32> to vector<32x256xf32>
    %316 = arith.addf %314, %315 : vector<32x256xf32>
    %317 = math.tanh %316 : vector<32x256xf32>
    %318 = arith.truncf %317 : vector<32x256xf32> to vector<32x256xbf16>
    %cst_80 = arith.constant dense<0.000000e+00> : vector<4x256xf32>
    %319 = tpu.matmul %3, %318, %cst_80 {dimension_numbers = #tpu.dot_dimension_numbers<[1], [0], [0], [1], [0, 0, 1, 1], [], []>} : vector<4x32xbf16>, vector<32x256xbf16>, vector<4x256xf32> -> vector<4x256xf32>
    %320 = vector.broadcast %6 : vector<4x1xf32> to vector<4x256xf32>
    %321 = arith.addf %319, %320 : vector<4x256xf32>
    %322 = vector.broadcast %303 : f32 to vector<4x256xf32>
    %323 = arith.mulf %322, %299 : vector<4x256xf32>
    %324 = vector.broadcast %305 : f32 to vector<4x256xf32>
    %325 = arith.mulf %324, %321 : vector<4x256xf32>
    %326 = arith.addf %323, %325 : vector<4x256xf32>
    %cst_81 = arith.constant -1.000000e+00 : f32
    %cst_82 = arith.constant 1.000000e+00 : f32
    %327 = vector.broadcast %cst_81 : f32 to vector<4x256xf32>
    %328 = arith.maximumf %327, %326 : vector<4x256xf32>
    %329 = vector.broadcast %cst_82 : f32 to vector<4x256xf32>
    %330 = arith.minimumf %329, %328 : vector<4x256xf32>
    %331 = arith.subf %299, %330 : vector<4x256xf32>
    %332 = vector.broadcast %287 : f32 to vector<4x256xf32>
    %333 = arith.mulf %331, %332 : vector<4x256xf32>
    %334 = vector.broadcast %289 : f32 to vector<4x256xf32>
    %335 = arith.mulf %334, %333 : vector<4x256xf32>
    %336 = arith.addf %299, %335 : vector<4x256xf32>
    %c9_83 = arith.constant 9 : index
    %337 = arith.index_cast %c3_i32 : i32 to index
    %338 = memref.load %arg0[%c9_83, %337] : memref<14x4xf32, #tpu.memory_space<smem>>
    %c10_84 = arith.constant 10 : index
    %339 = arith.index_cast %c3_i32 : i32 to index
    %340 = memref.load %arg0[%c10_84, %339] : memref<14x4xf32, #tpu.memory_space<smem>>
    %c11_85 = arith.constant 11 : index
    %341 = arith.index_cast %c3_i32 : i32 to index
    %342 = memref.load %arg0[%c11_85, %341] : memref<14x4xf32, #tpu.memory_space<smem>>
    %c12_86 = arith.constant 12 : index
    %343 = arith.index_cast %c3_i32 : i32 to index
    %344 = memref.load %arg0[%c12_86, %343] : memref<14x4xf32, #tpu.memory_space<smem>>
    %345 = vector.broadcast %344 : f32 to vector<32x1xf32>
    %346 = arith.mulf %345, %5 : vector<32x1xf32>
    %347 = arith.addf %4, %346 : vector<32x1xf32>
    %348 = vector.broadcast %338 : f32 to vector<4x256xf32>
    %349 = arith.mulf %348, %336 : vector<4x256xf32>
    %350 = arith.truncf %349 : vector<4x256xf32> to vector<4x256xbf16>
    %cst_87 = arith.constant dense<0.000000e+00> : vector<32x256xf32>
    %351 = tpu.matmul %1, %350, %cst_87 {dimension_numbers = #tpu.dot_dimension_numbers<[1], [0], [0], [1], [0, 0, 1, 1], [], []>} : vector<32x4xbf16>, vector<4x256xbf16>, vector<32x256xf32> -> vector<32x256xf32>
    %352 = vector.broadcast %347 : vector<32x1xf32> to vector<32x256xf32>
    %353 = arith.addf %351, %352 : vector<32x256xf32>
    %354 = math.tanh %353 : vector<32x256xf32>
    %355 = arith.truncf %354 : vector<32x256xf32> to vector<32x256xbf16>
    %cst_88 = arith.constant dense<0.000000e+00> : vector<4x256xf32>
    %356 = tpu.matmul %3, %355, %cst_88 {dimension_numbers = #tpu.dot_dimension_numbers<[1], [0], [0], [1], [0, 0, 1, 1], [], []>} : vector<4x32xbf16>, vector<32x256xbf16>, vector<4x256xf32> -> vector<4x256xf32>
    %357 = vector.broadcast %6 : vector<4x1xf32> to vector<4x256xf32>
    %358 = arith.addf %356, %357 : vector<4x256xf32>
    %359 = vector.broadcast %340 : f32 to vector<4x256xf32>
    %360 = arith.mulf %359, %336 : vector<4x256xf32>
    %361 = vector.broadcast %342 : f32 to vector<4x256xf32>
    %362 = arith.mulf %361, %358 : vector<4x256xf32>
    %363 = arith.addf %360, %362 : vector<4x256xf32>
    %cst_89 = arith.constant -1.000000e+00 : f32
    %cst_90 = arith.constant 1.000000e+00 : f32
    %364 = vector.broadcast %cst_89 : f32 to vector<4x256xf32>
    %365 = arith.maximumf %364, %363 : vector<4x256xf32>
    %366 = vector.broadcast %cst_90 : f32 to vector<4x256xf32>
    %367 = arith.minimumf %366, %365 : vector<4x256xf32>
    %368 = arith.subf %336, %367 : vector<4x256xf32>
    %369 = vector.broadcast %291 : f32 to vector<4x256xf32>
    %370 = arith.mulf %368, %369 : vector<4x256xf32>
    %371 = arith.addf %333, %370 : vector<4x256xf32>
    %372 = vector.broadcast %293 : f32 to vector<4x256xf32>
    %373 = arith.mulf %372, %371 : vector<4x256xf32>
    %374 = arith.addf %299, %373 : vector<4x256xf32>
    %c4_i32 = arith.constant 4 : i32
    %cst_91 = arith.constant -1.000000e+00 : f32
    %cst_92 = arith.constant 1.000000e+00 : f32
    %375 = vector.broadcast %cst_91 : f32 to vector<4x256xf32>
    %376 = arith.maximumf %375, %374 : vector<4x256xf32>
    %377 = vector.broadcast %cst_92 : f32 to vector<4x256xf32>
    %378 = arith.minimumf %377, %376 : vector<4x256xf32>
    %c0_93 = arith.constant 0 : index
    %c0_94 = arith.constant 0 : index
    %379 = vector.load %arg8[%c0_93, %c0_94] : memref<4x256xf32, #tpu.memory_space<vmem>>, vector<4x256xf32>
    tpu.vector_store %arg8[%c0_93, %c0_94], %378 {strides = array<i32>} : memref<4x256xf32, #tpu.memory_space<vmem>>, vector<4x256xf32>,
    return
  }
}

</mosaic_0001>

<bundles_post_ra>
// kernel: tpu_custom_call.1
= control target key start
LH: loop header
LB: loop body
LE: loop exit
PB: predicated region body
PF: predicated region fallthrough
CT: control target
= control target key end

     0   :  { %13 = vsyncpa [#allocation4], 0  ;;  %s2143_s0 = inlined_call_operand.vmem [shape: f32[14,4], index: 0, kind: input, shape index: {}]   ;;  %s2144_s1 = inlined_call_operand.vmem [shape: f32[4,256], index: 1, kind: input, shape index: {}]   ;;  %s2145_s2 = inlined_call_operand.vmem [shape: f32[4,4,256], index: 2, kind: input, shape index: {}]   ;;  %s2146_s3 = inlined_call_operand.vmem [shape: f32[32,4], index: 3, kind: input, shape index: {}]   ;;  %s2147_s4 = inlined_call_operand.vmem [shape: f32[32,1], index: 4, kind: input, shape index: {}]   ;;  %s2148_s5 = inlined_call_operand.vmem [shape: f32[32,1], index: 5, kind: input, shape index: {}]   ;;  %s2149_s6 = inlined_call_operand.vmem [shape: f32[4,32], index: 6, kind: input, shape index: {}]   ;;  %s2150_s7 = inlined_call_operand.vmem [shape: f32[4,1], index: 7, kind: input, shape index: {}]   ;;  %s2151_s8 = inlined_call_operand.hbm [shape: f32[4,256], index: 8, kind: output, shape index: {}]  }
   0x1   :  { %14 = vsyncpa [#allocation3], 0  ;;  %s20_s29 = sshll.u32 %s2143_s0, 4  ;;  %s21_s29 = int_to_ptr.vmem [resolvable:$true] %s20_s29 }
   0x2   :  { %s1736_s30 = scalar_lea.vmem %s21_s29, 256  ;;  %p1741_p1 = scmp.lt.s32.totalorder %s21_s29, %s21_s29 }
   0x3   :  { %p1737_p0 = scmp.ne.s32.totalorder %s21_s29, %s1736_s30  ;;  %p1742_p2 = scmp.lt.s32.totalorder %s1736_s30, %s1736_s30 }
   0x5   :  { %p1743_p3 = por %p1742_p2, %p1741_p1 }
   0x7   :  { %p1744_p4 = pnand %p1743_p3, %p1737_p0 }
   0x9   :  { %1747 = shalt.err (!%p1744_p4)
}
   0xa   :  { %s1772_s9 = smov [#allocation2]   ;;  %s1773_s10 = smov 128  }
   0xb   :  { %s1774_s11 = smov 8  }
   0xc   :  { %26 = dma.vmem_to_smem %s21_s29, 256, %s1772_s9, [#allocation4], %s1773_s10, %s1773_s10, %s1774_s11  }
   0xd   :  { %1768 = dma.done.wait [#allocation4], 256  }
   0xe   :  { %1769 = vsyncadd [#allocation4], 4294967040 }
   0xf   :  { %44 = sfence }
  0x10   :  { %s1505_s12 = sld [smem:[#allocation2 + $0x680]]  ;;  %v1775_v0 = vmov 0   ;;  %v63_v1 = vld [vmem:[%s2144_s1] sm:$0xff]  ;;  %v1838_v6 = vld [vmem:[%s2148_s5 + $0x10] sm:$0xff]  ;;  %v1843_v7 = vld [vmem:[%s2148_s5 + $0x18] sm:$0xff]  ;;  %vm123_vm0 = vcmask 1041408  }
  0x11   :  { %s67_s13 = sld [smem:[#allocation2]]  ;;  %162 = vmatprep.mubr.bf16.mxu0 %v1775_v0  ;;  %1606 = vset.pattern.permute.xlu0 %v1775_v0  ;;  %v72_v2 = vld [vmem:[%s2145_s2] sm:$0xff]  ;;  %v1853_v10 = vld [vmem:[%s2148_s5 + $0x8] sm:$0xff]  ;;  %v1858_v12 = vld [vmem:[%s2147_s4 + $0x10] sm:$0xff]  ;;  %vm116_vm1 = vcmask 31744   ;;  %vm200_vm2 = vcmask 261120  }
  0x12   :  { %s1510_s0 = sld [smem:[#allocation2 + $0x280]]  ;;  %1607 = vset.pattern.permute.xlu1 %v1775_v0  ;;  %236 = vmatprep.mubr.bf16.mxu1 %v1775_v0  ;;  %v1848_v8 = vld [vmem:[%s2148_s5] sm:$0xff]  ;;  %v1873_v19 = vld [vmem:[%s2147_s4 + $0x18] sm:$0xff]  ;;  %v1882_v24 = vld [vmem:[%s2147_s4 + $0x8] sm:$0xff] }
  0x13   :  { %s1513_s14 = sld [smem:[#allocation2 + $0x400]]  ;;  %v1863_v14 = vld [vmem:[%s2147_s4] sm:$0xff]  ;;  %v47_v30 = vld [vmem:[%s2146_s3 + $0x8] sm:$0xff]  ;;  %v48_v43 = vld [vmem:[%s2146_s3 + $0x10] sm:$0xff] }
  0x14   :  { %s1522_s19 = sld [smem:[#allocation2 + $0x600]]  ;;  %v46_v29 = vld [vmem:[%s2146_s3] sm:$0xff]  ;;  %v49_v44 = vld [vmem:[%s2146_s3 + $0x18] sm:$0xff] }
  0x15   :  { %v1895_v35 = vpack.c.bf16 %v47_v30, %v46_v29  ;;  %v62_v37 = vld [vmem:[%s2150_s7] sm:$0xf]  ;;  %s1546_s17 = sld [smem:[#allocation2 + $0x601]]  ;;  %v1916_v47 = vpack.c.bf16 %v49_v44, %v48_v43 }
  0x16   :  { %v65_v3 = vstv %s1505_s12  ;;  %s1537_s12 = sld [smem:[#allocation2 + $0x401]] }
  0x17   :  { %v66_v4 = vmul.f32 %v65_v3, %v63_v1  ;;  %v73_v5 = vstv %s67_s13  ;;  %s1561_s3 = sld [smem:[#allocation2 + $0x402]] }
  0x18   :  { %v74_v9 = vmul.f32 %v73_v5, %v72_v2  ;;  %v89_v11 = vstv %s1510_s0  ;;  %s1570_s21 = sld [smem:[#allocation2 + $0x602]] }
  0x19   :  { %v80_v13 = vstv %s1513_s14  ;;  %s1585_s22 = sld [smem:[#allocation2 + $0x403]] }
  0x1a   :  { %v1865_v15 = vadd.f32 %v74_v9, %v66_v4  ;;  %v83_v16 = vmul.f32 %v80_v13, %v1838_v6  ;;  %v84_v17 = vmul.f32 %v80_v13, %v1843_v7  ;;  %v81_v18 = vmul.f32 %v80_v13, %v1848_v8  ;;  %s1594_s23 = sld [smem:[#allocation2 + $0x603]] }
  0x1b   :  { %v82_v20 = vmul.f32 %v80_v13, %v1853_v10  ;;  %v267_v28 = vstv %s1522_s19  ;;  %v618_v54 = vstv %s1546_s17  ;;  %s1512_s25 = sld [smem:[#allocation2 + $0x380]] }
  0x1c   :  { %v90_v21 = vmul.f32 %v89_v11, %v1865_v15  ;;  %v87_v22 = vadd.f32 %v83_v16, %v1858_v12  ;;  %v85_v23 = vadd.f32 %v81_v18, %v1863_v14  ;;  %v88_v27 = vadd.f32 %v84_v17, %v1873_v19  ;;  %s1511_s26 = sld [smem:[#allocation2 + $0x300]] }
  0x1d   :  { %v86_v31 = vadd.f32 %v82_v20, %v1882_v24  ;;  %v270_v32 = vmul.f32 %v267_v28, %v1838_v6  ;;  %v271_v36 = vmul.f32 %v267_v28, %v1843_v7  ;;  %v268_v39 = vmul.f32 %v267_v28, %v1848_v8  ;;  %s1507_s27 = sld [smem:[#allocation2 + $0x100]] }
  0x1e   :  { %v92_v25 = vcombine.high %v90_v21, %v90_v21  ;;  %v94_v26 = vpack.c.bf16 %v90_v21, %v90_v21  ;;  %108 = vperm.xlu0 %1606, %v87_v22   ;;  %98 = vperm.xlu1 %1607, %v85_v23   ;;  %v269_v41 = vmul.f32 %v267_v28, %v1853_v10  ;;  %v448_v42 = vstv %s1537_s12  ;;  %s1519_s28 = sld [smem:[#allocation2 + $0x480]] }
  0x1f   :  { %v274_v38 = vadd.f32 %v270_v32, %v1858_v12  ;;  %v275_v40 = vadd.f32 %v271_v36, %v1873_v19  ;;  %v272_v45 = vadd.f32 %v268_v39, %v1863_v14  ;;  %v451_v46 = vmul.f32 %v448_v42, %v1838_v6  ;;  %s1521_s29 = sld [smem:[#allocation2 + $0x580]] }
  0x20   :  { %v95_v33 = vpack.c.bf16 %v92_v25, %v92_v25  ;;  %v125_v34 = vsel %vm123_vm0, %v94_v26, 0  ;;  %v273_v48 = vadd.f32 %v269_v41, %v1882_v24  ;;  %v452_v49 = vmul.f32 %v448_v42, %v1843_v7  ;;  %s1520_s30 = sld [smem:[#allocation2 + $0x500]] }
  0x21   :  { %v455_v50 = vadd.f32 %v451_v46, %v1858_v12  ;;  %v449_v51 = vmul.f32 %v448_v42, %v1848_v8  ;;  %v450_v53 = vmul.f32 %v448_v42, %v1853_v10  ;;  %v621_v56 = vmul.f32 %v618_v54, %v1838_v6  ;;  %s1508_s5 = sld [smem:[#allocation2 + $0x180]] }
  0x22   :  { %1514 = vmatprep.subr.msk.bf16.mxu0 %vm123_vm0, %v95_v33  ;;  %113 = vperm.xlu0 %1606, %v88_v27   ;;  %v456_v52 = vadd.f32 %v452_v49, %v1873_v19  ;;  %v622_v58 = vmul.f32 %v618_v54, %v1843_v7  ;;  %v619_v60 = vmul.f32 %v618_v54, %v1848_v8  ;;  %v799_v63 = vstv %s1561_s3  ;;  %s1509_s9 = sld [smem:[#allocation2 + $0x200]] }
  0x23   :  { %145 = vmatpush1.bf16.msra.mxu0 %v125_v34  ;;  %103 = vperm.xlu1 %1607, %v86_v31   ;;  %v453_v55 = vadd.f32 %v449_v51, %v1863_v14  ;;  %v454_v57 = vadd.f32 %v450_v53, %v1882_v24  ;;  %v625_v59 = vadd.f32 %v621_v56, %v1858_v12  ;;  %v969_v16 = vstv %s1570_s21  ;;  %s1528_s10 = sld [smem:[#allocation2 + $0x1]] }
  0x24   :  { %v626_v61 = vadd.f32 %v622_v58, %v1873_v19  ;;  %v620_v62 = vmul.f32 %v618_v54, %v1853_v10  ;;  %v623_v1 = vadd.f32 %v619_v60, %v1863_v14  ;;  %v802_v2 = vmul.f32 %v799_v63, %v1838_v6  ;;  %s1534_s11 = sld [smem:[#allocation2 + $0x281]] }
  0x25   :  { %v803_v4 = vmul.f32 %v799_v63, %v1843_v7  ;;  %v800_v9 = vmul.f32 %v799_v63, %v1848_v8  ;;  %v801_v13 = vmul.f32 %v799_v63, %v1853_v10  ;;  %v972_v18 = vmul.f32 %v969_v16, %v1838_v6  ;;  %s1536_s0 = sld [smem:[#allocation2 + $0x381]] }
  0x26   :  { %1515 = vmatmul.mubr.msk.bf16.vlgmr.msra.gmra.mxu0 %vm116_vm1, %v1895_v35  ;;  %197 = vperm.xlu0 %1606, %v62_v37   ;;  %v624_v3 = vadd.f32 %v620_v62, %v1882_v24  ;;  %v806_v5 = vadd.f32 %v802_v2, %v1858_v12  ;;  %v973_v21 = vmul.f32 %v969_v16, %v1843_v7  ;;  %v1150_v27 = vstv %s1585_s22  ;;  %s1535_s14 = sld [smem:[#allocation2 + $0x301]] }
  0x27   :  { %172 = vmatprep.mubr.bf16.mxu0 %v1775_v0  ;;  %295 = vperm.xlu1 %1607, %v274_v38   ;;  %v807_v11 = vadd.f32 %v803_v4, %v1873_v19  ;;  %v804_v17 = vadd.f32 %v800_v9, %v1863_v14  ;;  %v805_v20 = vadd.f32 %v801_v13, %v1882_v24  ;;  %v1320_v37 = vstv %s1594_s23  ;;  %v52_v13 = vld [vmem:[%s2149_s6] sm:$0xf]  ;;  %s1506_s6 = sld [smem:[#allocation2 + $0x80]] }
  0x28   :  { %v976_v22 = vadd.f32 %v972_v18, %v1858_v12  ;;  %v970_v23 = vmul.f32 %v969_v16, %v1848_v8  ;;  %v977_v25 = vadd.f32 %v973_v21, %v1873_v19  ;;  %v971_v26 = vmul.f32 %v969_v16, %v1853_v10  ;;  %s1529_s15 = sld [smem:[#allocation2 + $0x81]] }
  0x29   :  { %v1153_v29 = vmul.f32 %v1150_v27, %v1838_v6  ;;  %v1154_v31 = vmul.f32 %v1150_v27, %v1843_v7  ;;  %v1151_v33 = vmul.f32 %v1150_v27, %v1848_v8  ;;  %v1152_v36 = vmul.f32 %v1150_v27, %v1853_v10  ;;  %s1530_s4 = sld [smem:[#allocation2 + $0x101]] }
  0x2a   :  { %300 = vperm.xlu0 %1606, %v275_v40   ;;  %v974_v28 = vadd.f32 %v970_v23, %v1863_v14  ;;  %v975_v30 = vadd.f32 %v971_v26, %v1882_v24  ;;  %v1323_v39 = vmul.f32 %v1320_v37, %v1838_v6  ;;  %v1324_v41 = vmul.f32 %v1320_v37, %v1843_v7  ;;  %s1543_s16 = sld [smem:[#allocation2 + $0x481]] }
  0x2b   :  { %285 = vperm.xlu1 %1607, %v272_v45   ;;  %v1157_v32 = vadd.f32 %v1153_v29, %v1858_v12  ;;  %v1158_v34 = vadd.f32 %v1154_v31, %v1873_v19  ;;  %v1155_v38 = vadd.f32 %v1151_v33, %v1863_v14  ;;  %v1156_v40 = vadd.f32 %v1152_v36, %v1882_v24  ;;  %s1545_s17 = sld [smem:[#allocation2 + $0x581]] }
  0x2c   :  { %v1327_v42 = vadd.f32 %v1323_v39, %v1858_v12  ;;  %v1321_v43 = vmul.f32 %v1320_v37, %v1848_v8  ;;  %v1328_v44 = vadd.f32 %v1324_v41, %v1873_v19  ;;  %v1322_v45 = vmul.f32 %v1320_v37, %v1853_v10  ;;  %s1544_s18 = sld [smem:[#allocation2 + $0x501]] }
  0x2d   :  { %v1972_v18 = vpack.c.bf16 %v52_v13, %v52_v13  ;;  %v247_v23 = vstv %s1512_s25  ;;  %v245_v26 = vstv %s1511_s26  ;;  %v258_v37 = vstv %s1506_s6  ;;  %s1531_s19 = sld [smem:[#allocation2 + $0x181]] }
  0x2e   :  { %1516 = vmatmul.mubr.msk.bf16.gmra.mxu0 %vm116_vm1, %v1916_v47  ;;  %290 = vperm.xlu0 %1606, %v273_v48   ;;  %v1325_v46 = vadd.f32 %v1321_v43, %v1863_v14  ;;  %v1326_v6 = vadd.f32 %v1322_v45, %v1882_v24  ;;  %v260_v39 = vstv %s1507_s27  ;;  %s1532_s7 = sld [smem:[#allocation2 + $0x201]] }
  0x2f   :  { %476 = vperm.xlu1 %1607, %v455_v50   ;;  %406 = vmatprep.mubr.bf16.mxu0 %v1775_v0  ;;  %s1552_s20 = sld [smem:[#allocation2 + $0x2]] }
  0x30   :  { %s1558_s3 = sld [smem:[#allocation2 + $0x282]] }
  0x31   :  { %s1560_s23 = sld [smem:[#allocation2 + $0x382]] }
  0x32   :  { %481 = vperm.xlu0 %1606, %v456_v52   ;;  %s1559_s24 = sld [smem:[#allocation2 + $0x302]] }
  0x33   :  { %466 = vperm.xlu1 %1607, %v453_v55   ;;  %s1553_s1 = sld [smem:[#allocation2 + $0x82]] }
  0x34   :  { %s1554_s25 = sld [smem:[#allocation2 + $0x102]] }
  0x35   :  { %s1567_s26 = sld [smem:[#allocation2 + $0x482]] }
  0x36   :  { %471 = vperm.xlu0 %1606, %v454_v57   ;;  %s1569_s6 = sld [smem:[#allocation2 + $0x582]] }
  0x37   :  { %646 = vperm.xlu1 %1607, %v625_v59   ;;  %s1568_s27 = sld [smem:[#allocation2 + $0x502]] }
  0x38   :  { %s1577_s12 = sld [smem:[#allocation2 + $0x83]] }
  0x39   :  { %s1578_s13 = sld [smem:[#allocation2 + $0x103]] }
  0x3a   :  { %651 = vperm.xlu0 %1606, %v626_v61  }
  0x3b   :  { %636 = vperm.xlu1 %1607, %v623_v1  }
  0x3e   :  { %641 = vperm.xlu0 %1606, %v624_v3  }
  0x3f   :  { %827 = vperm.xlu1 %1607, %v806_v5  }
  0x42   :  { %832 = vperm.xlu0 %1606, %v807_v11  }
  0x43   :  { %817 = vperm.xlu1 %1607, %v804_v17  }
  0x46   :  { %822 = vperm.xlu0 %1606, %v805_v20  }
  0x47   :  { %997 = vperm.xlu1 %1607, %v976_v22  }
  0x4a   :  { %1002 = vperm.xlu0 %1606, %v977_v25  }
  0x4b   :  { %987 = vperm.xlu1 %1607, %v974_v28  }
  0x4e   :  { %992 = vperm.xlu0 %1606, %v975_v30   ;;  %v246_v30 = vmul.f32 %v245_v26, %v1865_v15 }
  0x4f   :  { %1178 = vperm.xlu1 %1607, %v1157_v32  }
  0x52   :  { %1183 = vperm.xlu0 %1606, %v1158_v34  }
  0x53   :  { %1168 = vperm.xlu1 %1607, %v1155_v38  }
  0x56   :  { %1173 = vperm.xlu0 %1606, %v1156_v40  }
  0x57   :  { %1348 = vperm.xlu1 %1607, %v1327_v42   ;;  %v276_v42 = vstv %s1519_s28  ;;  %s1555_s28 = sld [smem:[#allocation2 + $0x182]] }
  0x5a   :  { %1353 = vperm.xlu0 %1606, %v1328_v44  }
  0x5b   :  { %1338 = vperm.xlu1 %1607, %v1325_v46  }
  0x5e   :  { %1343 = vperm.xlu0 %1606, %v1326_v6  }
  0x99   :  { %v99_v49 = vpop.permute.xlu1 %98  ;;  %v109_v12 = vpop.permute.xlu0 %108 }
  0x9d   :  { %v114_v10 = vpop.permute.xlu0 %113 }
  0x9e   :  { %v104_v52 = vpop.permute.xlu1 %103 }
  0xa1   :  { %v1977_v20 = vpop.permute.xlu0 %197 }
  0xe6   :  { %v164_v48 = vpop.f32.mrf.mxu0 }
  0xe7   :  { %v165_v60 = vadd.f32 %v164_v48, %v99_v49 }
  0xe8   :  { %v166_v7 = vpop.f32.mrf.mxu0 }
  0xe9   :  { %v167_v24 = vadd.f32 %v166_v7, %v99_v49 }
  0xea   :  { %v168_v50 = vpop.f32.mrf.mxu0 }
  0xeb   :  { %v169_v59 = vadd.f32 %v168_v50, %v104_v52  ;;  %v301_v50 = vpop.permute.xlu0 %300 }
  0xec   :  { %v170_v51 = vpop.f32.mrf.mxu0 }
  0xed   :  { %v171_v53 = vadd.f32 %v170_v51, %v104_v52 }
  0xee   :  { %v174_v8 = vpop.f32.mrf.mxu0 }
  0xef   :  { %1608 = vtanh.f32 %v171_v53  ;;  %v175_v14 = vadd.f32 %v174_v8, %v109_v12  ;;  %v296_v8 = vpop.permute.xlu1 %295  ;;  %v291_v53 = vpop.permute.xlu0 %290 }
  0xf0   :  { %v176_v19 = vpop.f32.mrf.mxu0 }
  0xf1   :  { %v177_v54 = vadd.f32 %v176_v19, %v109_v12 }
  0xf2   :  { %v178_v55 = vpop.f32.mrf.mxu0 }
  0xf3   :  { %v179_v56 = vadd.f32 %v178_v55, %v114_v10  ;;  %1610 = vtanh.f32 %v177_v54 }
  0xf4   :  { %v180_v57 = vpop.f32.mrf.mxu0 }
  0xf5   :  { %v181_v58 = vadd.f32 %v180_v57, %v114_v10  ;;  %1612 = vtanh.f32 %v179_v56 }
  0xf7   :  { %1614 = vtanh.f32 %v181_v58 }
  0xf8   :  { %1616 = vtanh.f32 %v175_v14  ;;  %v286_v14 = vpop.permute.xlu1 %285 }
  0xf9   :  { %1618 = vtanh.f32 %v167_v24 }
  0xfa   :  { %1620 = vtanh.f32 %v169_v59 }
  0xfb   :  { %1622 = vtanh.f32 %v165_v60 }
  0xfc   :  { %v1609_v61 = vpop.eup %1608 }
 0x100   :  { %v1611_v62 = vpop.eup %1610 }
 0x102   :  { %v1613_v63 = vpop.eup %1612 }
 0x104   :  { %v1615_v1 = vpop.eup %1614 }
 0x105   :  { %v1617_v2 = vpop.eup %1616  ;;  %v194_v3 = vpack.c.bf16 %v1615_v1, %v1611_v62 }
 0x106   :  { %v1619_v4 = vpop.eup %1618  ;;  %v193_v5 = vpack.c.bf16 %v1613_v63, %v1617_v2 }
 0x107   :  { %v1621_v9 = vpop.eup %1620  ;;  %216 = vmatprep.subr.bf16.mxu1 %v194_v3  ;;  %v192_v11 = vpack.c.bf16 %v1609_v61, %v1619_v4 }
 0x108   :  { %217 = vmatpush1.bf16.msra.mxu1 %v193_v5  ;;  %v1623_v16 = vpop.eup %1622 }
 0x109   :  { %218 = vmatprep.subr.bf16.mxu1 %v192_v11  ;;  %v191_v17 = vpack.c.bf16 %v1621_v9, %v1623_v16 }
 0x10c   :  { %219 = vmatpush1.bf16.msra.mxu1 %v191_v17 }
 0x10f   :  { %1517 = vmatmul.mubr.msk.bf16.vlgmr.msra.gmra.mxu1 %vm200_vm2, %v1972_v18 }
 0x110   :  { %341 = vmatprep.mubr.bf16.mxu1 %v1775_v0 }
 0x1cf   :  { %v238_v21 = vpop.f32.mrf.mxu1 }
 0x1d0   :  { %v239_v22 = vadd.f32 %v238_v21, %v1977_v20 }
 0x1d1   :  { %v240_v25 = vpop.f32.mrf.mxu1 }
 0x1d2   :  { %v241_v27 = vadd.f32 %v240_v25, %v1977_v20  ;;  %v248_v29 = vmul.f32 %v247_v23, %v239_v22 }
 0x1d3   :  { %v242_v28 = vpop.f32.mrf.mxu1 }
 0x1d4   :  { %v249_v31 = vmul.f32 %v247_v23, %v241_v27  ;;  %v417_v23 = vstv %s1521_s29  ;;  %v415_v27 = vstv %s1520_s30  ;;  %s1556_s29 = sld [smem:[#allocation2 + $0x202]] }
 0x1d5   :  { %v243_v32 = vpop.f32.mrf.mxu1  ;;  %s1576_s30 = sld [smem:[#allocation2 + $0x3]] }
 0x1d6   :  { %v252_v33 = vcombine.low %v248_v29, %v249_v31 }
 0x1d8   :  { %v254_v34 = vadd.f32 %v252_v33, %v246_v30 }
 0x1da   :  { %v1518_v36 = vclamps-f32 %v254_v34, 1.0 }
 0x1dc   :  { %v257_v38 = vsub.f32 %v1865_v15, %v1518_v36 }
 0x1de   :  { %v1983_v40 = vmul.f32 %v258_v37, %v257_v38  ;;  %v428_v37 = vstv %s1508_s5  ;;  %s1582_s5 = sld [smem:[#allocation2 + $0x283]] }
 0x1e0   :  { %v261_v41 = vmul.f32 %v260_v39, %v1983_v40 }
 0x1e2   :  { %v1987_v43 = vadd.f32 %v261_v41, %v1865_v15  ;;  %v431_v41 = vstv %s1509_s9 }
 0x1e4   :  { %v277_v44 = vmul.f32 %v276_v42, %v1987_v43  ;;  %v416_v32 = vmul.f32 %v415_v27, %v1987_v43  ;;  %v1533_v42 = vld [vmem:[%s2145_s2 + $0x8] sm:$0xff] }
 0x1e6   :  { %v279_v45 = vcombine.high %v277_v44, %v277_v44  ;;  %v281_v46 = vpack.c.bf16 %v277_v44, %v277_v44  ;;  %v441_v44 = vstv %s1528_s10 }
 0x1e8   :  { %v282_v6 = vpack.c.bf16 %v279_v45, %v279_v45  ;;  %v304_v48 = vsel %vm123_vm0, %v281_v46, 0 }
 0x1ea   :  { %1523 = vmatprep.subr.msk.bf16.mxu1 %vm123_vm0, %v282_v6  ;;  %v442_v6 = vmul.f32 %v1533_v42, %v441_v44  ;;  %v609_v42 = vstv %s1529_s15  ;;  %s1592_s15 = sld [smem:[#allocation2 + $0x503]] }
 0x1eb   :  { %324 = vmatpush1.bf16.msra.mxu1 %v304_v48 }
 0x1ee   :  { %1524 = vmatmul.mubr.msk.bf16.vlgmr.msra.gmra.mxu1 %vm116_vm1, %v1895_v35 }
 0x1ef   :  { %351 = vmatprep.mubr.bf16.mxu1 %v1775_v0 }
 0x1f6   :  { %1525 = vmatmul.mubr.msk.bf16.gmra.mxu1 %vm116_vm1, %v1916_v47 }
 0x1f7   :  { %587 = vmatprep.mubr.bf16.mxu1 %v1775_v0 }
 0x2ae   :  { %v343_v7 = vpop.f32.mrf.mxu1 }
 0x2af   :  { %v344_v61 = vadd.f32 %v343_v7, %v286_v14  ;;  %v457_v7 = vstv %s1534_s11  ;;  %s1583_s11 = sld [smem:[#allocation2 + $0x303]] }
 0x2b0   :  { %v345_v49 = vpop.f32.mrf.mxu1 }
 0x2b1   :  { %v346_v58 = vadd.f32 %v345_v49, %v286_v14 }
 0x2b2   :  { %v347_v12 = vpop.f32.mrf.mxu1 }
 0x2b3   :  { %v348_v60 = vadd.f32 %v347_v12, %v291_v53 }
 0x2b4   :  { %v349_v51 = vpop.f32.mrf.mxu1 }
 0x2b5   :  { %v350_v19 = vadd.f32 %v349_v51, %v291_v53 }
 0x2b6   :  { %v353_v52 = vpop.f32.mrf.mxu1 }
 0x2b7   :  { %1624 = vtanh.f32 %v350_v19  ;;  %v354_v57 = vadd.f32 %v353_v52, %v296_v8  ;;  %v482_v52 = vpop.permute.xlu0 %481 }
 0x2b8   :  { %v355_v54 = vpop.f32.mrf.mxu1 }
 0x2b9   :  { %v356_v10 = vadd.f32 %v355_v54, %v296_v8  ;;  %v477_v54 = vpop.permute.xlu1 %476 }
 0x2ba   :  { %v357_v55 = vpop.f32.mrf.mxu1 }
 0x2bb   :  { %v358_v56 = vadd.f32 %v357_v55, %v301_v50  ;;  %1626 = vtanh.f32 %v356_v10  ;;  %v472_v55 = vpop.permute.xlu0 %471 }
 0x2bc   :  { %v359_v24 = vpop.f32.mrf.mxu1 }
 0x2bd   :  { %v360_v59 = vadd.f32 %v359_v24, %v301_v50  ;;  %1628 = vtanh.f32 %v358_v56 }
 0x2bf   :  { %1630 = vtanh.f32 %v360_v59  ;;  %v467_v59 = vpop.permute.xlu1 %466 }
 0x2c0   :  { %1632 = vtanh.f32 %v354_v57 }
 0x2c1   :  { %1634 = vtanh.f32 %v346_v58 }
 0x2c2   :  { %1636 = vtanh.f32 %v348_v60 }
 0x2c3   :  { %1638 = vtanh.f32 %v344_v61 }
 0x2c4   :  { %v1625_v62 = vpop.eup %1624 }
 0x2c8   :  { %v1627_v63 = vpop.eup %1626 }
 0x2ca   :  { %v1629_v1 = vpop.eup %1628 }
 0x2cc   :  { %v1631_v2 = vpop.eup %1630 }
 0x2cd   :  { %v1633_v3 = vpop.eup %1632  ;;  %v373_v4 = vpack.c.bf16 %v1631_v2, %v1627_v63 }
 0x2ce   :  { %v1635_v5 = vpop.eup %1634  ;;  %v372_v9 = vpack.c.bf16 %v1629_v1, %v1633_v3 }
 0x2cf   :  { %v1637_v11 = vpop.eup %1636  ;;  %386 = vmatprep.subr.bf16.mxu0 %v373_v4  ;;  %v371_v13 = vpack.c.bf16 %v1625_v62, %v1635_v5 }
 0x2d0   :  { %387 = vmatpush1.bf16.msra.mxu0 %v372_v9  ;;  %v1639_v16 = vpop.eup %1638 }
 0x2d1   :  { %388 = vmatprep.subr.bf16.mxu0 %v371_v13  ;;  %v370_v17 = vpack.c.bf16 %v1637_v11, %v1639_v16 }
 0x2d4   :  { %389 = vmatpush1.bf16.msra.mxu0 %v370_v17 }
 0x2d7   :  { %1526 = vmatmul.mubr.msk.bf16.vlgmr.msra.gmra.mxu0 %vm200_vm2, %v1972_v18 }
 0x2d8   :  { %522 = vmatprep.mubr.bf16.mxu0 %v1775_v0 }
 0x397   :  { %v408_v21 = vpop.f32.mrf.mxu0 }
 0x398   :  { %v409_v22 = vadd.f32 %v408_v21, %v1977_v20 }
 0x399   :  { %v410_v25 = vpop.f32.mrf.mxu0 }
 0x39a   :  { %v411_v26 = vadd.f32 %v410_v25, %v1977_v20  ;;  %v418_v29 = vmul.f32 %v417_v23, %v409_v22 }
 0x39b   :  { %v412_v28 = vpop.f32.mrf.mxu0 }
 0x39c   :  { %v419_v30 = vmul.f32 %v417_v23, %v411_v26  ;;  %v598_v28 = vstv %s1536_s0  ;;  %s1591_s0 = sld [smem:[#allocation2 + $0x483]] }
 0x39d   :  { %v413_v31 = vpop.f32.mrf.mxu0 }
 0x39e   :  { %v422_v33 = vcombine.low %v418_v29, %v419_v30  ;;  %v596_v31 = vstv %s1535_s14  ;;  %s1593_s14 = sld [smem:[#allocation2 + $0x583]] }
 0x3a0   :  { %v424_v34 = vadd.f32 %v422_v33, %v416_v32 }
 0x3a2   :  { %v1527_v36 = vclamps-f32 %v424_v34, 1.0 }
 0x3a4   :  { %v427_v38 = vsub.f32 %v1987_v43, %v1527_v36 }
 0x3a6   :  { %v429_v39 = vmul.f32 %v428_v37, %v427_v38 }
 0x3a8   :  { %v430_v45 = vadd.f32 %v429_v39, %v1983_v40 }
 0x3aa   :  { %v432_v46 = vmul.f32 %v431_v41, %v430_v45  ;;  %v611_v45 = vstv %s1530_s4  ;;  %s1579_s4 = sld [smem:[#allocation2 + $0x183]] }
 0x3ac   :  { %v433_v48 = vadd.f32 %v432_v46, %v1865_v15 }
 0x3ae   :  { %v2010_v49 = vadd.f32 %v442_v6, %v433_v48  ;;  %v627_v48 = vstv %s1543_s16  ;;  %s1580_s16 = sld [smem:[#allocation2 + $0x203]] }
 0x3b0   :  { %v458_v50 = vmul.f32 %v457_v7, %v2010_v49  ;;  %v597_v37 = vmul.f32 %v596_v31, %v2010_v49  ;;  %v766_v31 = vstv %s1544_s18 }
 0x3b2   :  { %v460_v43 = vcombine.high %v458_v50, %v458_v50  ;;  %v462_v12 = vpack.c.bf16 %v458_v50, %v458_v50 }
 0x3b4   :  { %v463_v51 = vpack.c.bf16 %v460_v43, %v460_v43  ;;  %v485_v8 = vsel %vm123_vm0, %v462_v12, 0 }
 0x3b6   :  { %1538 = vmatprep.subr.msk.bf16.mxu0 %vm123_vm0, %v463_v51 }
 0x3b7   :  { %505 = vmatpush1.bf16.msra.mxu0 %v485_v8 }
 0x3ba   :  { %1539 = vmatmul.mubr.msk.bf16.vlgmr.msra.gmra.mxu0 %vm116_vm1, %v1895_v35 }
 0x3bb   :  { %532 = vmatprep.mubr.bf16.mxu0 %v1775_v0 }
 0x3c2   :  { %1540 = vmatmul.mubr.msk.bf16.gmra.mxu0 %vm116_vm1, %v1916_v47 }
 0x3c3   :  { %757 = vmatprep.mubr.bf16.mxu0 %v1775_v0 }
 0x47a   :  { %v524_v15 = vpop.f32.mrf.mxu0 }
 0x47b   :  { %v525_v2 = vadd.f32 %v524_v15, %v467_v59 }
 0x47c   :  { %v526_v40 = vpop.f32.mrf.mxu0 }
 0x47d   :  { %v527_v62 = vadd.f32 %v526_v40, %v467_v59 }
 0x47e   :  { %v528_v53 = vpop.f32.mrf.mxu0 }
 0x47f   :  { %v529_v1 = vadd.f32 %v528_v53, %v472_v55 }
 0x480   :  { %v530_v19 = vpop.f32.mrf.mxu0 }
 0x481   :  { %v531_v56 = vadd.f32 %v530_v19, %v472_v55 }
 0x482   :  { %v534_v10 = vpop.f32.mrf.mxu0 }
 0x483   :  { %1640 = vtanh.f32 %v531_v56  ;;  %v535_v60 = vadd.f32 %v534_v10, %v477_v54 }
 0x484   :  { %v536_v14 = vpop.f32.mrf.mxu0 }
 0x485   :  { %v537_v57 = vadd.f32 %v536_v14, %v477_v54  ;;  %v647_v54 = vpop.permute.xlu1 %646 }
 0x486   :  { %v538_v24 = vpop.f32.mrf.mxu0 }
 0x487   :  { %v539_v58 = vadd.f32 %v538_v24, %v482_v52  ;;  %1642 = vtanh.f32 %v537_v57 }
 0x488   :  { %v540_v61 = vpop.f32.mrf.mxu0 }
 0x489   :  { %v541_v63 = vadd.f32 %v540_v61, %v482_v52  ;;  %1644 = vtanh.f32 %v539_v58  ;;  %v652_v52 = vpop.permute.xlu0 %651  ;;  %v637_v59 = vpop.permute.xlu1 %636 }
 0x48b   :  { %1646 = vtanh.f32 %v541_v63 }
 0x48c   :  { %1648 = vtanh.f32 %v535_v60 }
 0x48d   :  { %1650 = vtanh.f32 %v527_v62  ;;  %v642_v55 = vpop.permute.xlu0 %641 }
 0x48e   :  { %1652 = vtanh.f32 %v529_v1 }
 0x48f   :  { %1654 = vtanh.f32 %v525_v2 }
 0x490   :  { %v1641_v3 = vpop.eup %1640 }
 0x494   :  { %v1643_v4 = vpop.eup %1642 }
 0x496   :  { %v1645_v5 = vpop.eup %1644 }
 0x498   :  { %v1647_v9 = vpop.eup %1646 }
 0x499   :  { %v1649_v11 = vpop.eup %1648  ;;  %v554_v13 = vpack.c.bf16 %v1647_v9, %v1643_v4 }
 0x49a   :  { %v1651_v16 = vpop.eup %1650  ;;  %v553_v17 = vpack.c.bf16 %v1645_v5, %v1649_v11 }
 0x49b   :  { %v1653_v21 = vpop.eup %1652  ;;  %567 = vmatprep.subr.bf16.mxu1 %v554_v13  ;;  %v552_v22 = vpack.c.bf16 %v1641_v3, %v1651_v16 }
 0x49c   :  { %568 = vmatpush1.bf16.msra.mxu1 %v553_v17  ;;  %v1655_v23 = vpop.eup %1654 }
 0x49d   :  { %569 = vmatprep.subr.bf16.mxu1 %v552_v22  ;;  %v551_v25 = vpack.c.bf16 %v1653_v21, %v1655_v23 }
 0x4a0   :  { %570 = vmatpush1.bf16.msra.mxu1 %v551_v25 }
 0x4a3   :  { %1541 = vmatmul.mubr.msk.bf16.vlgmr.msra.gmra.mxu1 %vm200_vm2, %v1972_v18 }
 0x4a4   :  { %692 = vmatprep.mubr.bf16.mxu1 %v1775_v0 }
 0x563   :  { %v589_v26 = vpop.f32.mrf.mxu1 }
 0x564   :  { %v590_v27 = vadd.f32 %v589_v26, %v1977_v20 }
 0x565   :  { %v591_v29 = vpop.f32.mrf.mxu1 }
 0x566   :  { %v592_v30 = vadd.f32 %v591_v29, %v1977_v20  ;;  %v599_v33 = vmul.f32 %v598_v28, %v590_v27 }
 0x567   :  { %v593_v32 = vpop.f32.mrf.mxu1 }
 0x568   :  { %v600_v34 = vmul.f32 %v598_v28, %v592_v30  ;;  %v768_v28 = vstv %s1545_s17  ;;  %s1776_s17 = smov [#allocation5]  }
 0x569   :  { %v594_v36 = vpop.f32.mrf.mxu1  ;;  %s1496_s18 = sshll.u32 %s1776_s17, 4  ;;  %s1497_s18 = int_to_ptr.vmem [resolvable:$true] %s1496_s18 }
 0x56a   :  { %v603_v38 = vcombine.low %v599_v33, %v600_v34  ;;  %p1753_p6 = scmp.lt.s32.totalorder %s1497_s18, %s1497_s18 }
 0x56c   :  { %v605_v39 = vadd.f32 %v603_v38, %v597_v37 }
 0x56e   :  { %v1542_v41 = vclamps-f32 %v605_v39, 1.0 }
 0x570   :  { %v608_v44 = vsub.f32 %v2010_v49, %v1542_v41 }
 0x572   :  { %v2028_v46 = vmul.f32 %v609_v42, %v608_v44  ;;  %v779_v42 = vstv %s1531_s19  ;;  %s1748_s19 = scalar_lea.vmem %s1497_s18, 128 }
 0x573   :  { %p1749_p5 = scmp.ne.s32.totalorder %s1497_s18, %s1748_s19  ;;  %p1754_p7 = scmp.lt.s32.totalorder %s1748_s19, %s1748_s19 }
 0x574   :  { %v612_v6 = vmul.f32 %v611_v45, %v2028_v46 }
 0x575   :  { %p1755_p8 = por %p1754_p7, %p1753_p6 }
 0x576   :  { %v2032_v7 = vadd.f32 %v612_v6, %v2010_v49  ;;  %v782_v6 = vstv %s1532_s7 }
 0x577   :  { %p1756_p9 = pnand %p1755_p8, %p1749_p5 }
 0x578   :  { %v628_v50 = vmul.f32 %v627_v48, %v2032_v7  ;;  %v767_v37 = vmul.f32 %v766_v31, %v2032_v7  ;;  %v1557_v48 = vld [vmem:[%s2145_s2 + $0x10] sm:$0xff] }
 0x57a   :  { %v630_v43 = vcombine.high %v628_v50, %v628_v50  ;;  %v632_v12 = vpack.c.bf16 %v628_v50, %v628_v50  ;;  %v792_v50 = vstv %s1552_s20 }
 0x57c   :  { %v633_v51 = vpack.c.bf16 %v630_v43, %v630_v43  ;;  %v655_v8 = vsel %vm123_vm0, %v632_v12, 0 }
 0x57e   :  { %1547 = vmatprep.subr.msk.bf16.mxu1 %vm123_vm0, %v633_v51  ;;  %v793_v51 = vmul.f32 %v1557_v48, %v792_v50  ;;  %v960_v48 = vstv %s1553_s1 }
 0x57f   :  { %675 = vmatpush1.bf16.msra.mxu1 %v655_v8 }
 0x582   :  { %1548 = vmatmul.mubr.msk.bf16.vlgmr.msra.gmra.mxu1 %vm116_vm1, %v1895_v35 }
 0x583   :  { %702 = vmatprep.mubr.bf16.mxu1 %v1775_v0 }
 0x58a   :  { %1549 = vmatmul.mubr.msk.bf16.gmra.mxu1 %vm116_vm1, %v1916_v47 }
 0x58b   :  { %938 = vmatprep.mubr.bf16.mxu1 %v1775_v0 }
 0x642   :  { %v694_v15 = vpop.f32.mrf.mxu1 }
 0x643   :  { %v695_v2 = vadd.f32 %v694_v15, %v637_v59  ;;  %v808_v15 = vstv %s1558_s3 }
 0x644   :  { %v696_v40 = vpop.f32.mrf.mxu1 }
 0x645   :  { %v697_v62 = vadd.f32 %v696_v40, %v637_v59 }
 0x646   :  { %v698_v53 = vpop.f32.mrf.mxu1 }
 0x647   :  { %v699_v1 = vadd.f32 %v698_v53, %v642_v55 }
 0x648   :  { %v700_v19 = vpop.f32.mrf.mxu1 }
 0x649   :  { %v701_v56 = vadd.f32 %v700_v19, %v642_v55 }
 0x64a   :  { %v704_v10 = vpop.f32.mrf.mxu1 }
 0x64b   :  { %1656 = vtanh.f32 %v701_v56  ;;  %v705_v60 = vadd.f32 %v704_v10, %v647_v54  ;;  %v833_v10 = vpop.permute.xlu0 %832 }
 0x64c   :  { %v706_v14 = vpop.f32.mrf.mxu1 }
 0x64d   :  { %v707_v57 = vadd.f32 %v706_v14, %v647_v54  ;;  %v828_v14 = vpop.permute.xlu1 %827 }
 0x64e   :  { %v708_v24 = vpop.f32.mrf.mxu1 }
 0x64f   :  { %v709_v58 = vadd.f32 %v708_v24, %v652_v52  ;;  %1658 = vtanh.f32 %v707_v57  ;;  %v823_v24 = vpop.permute.xlu0 %822 }
 0x650   :  { %v710_v61 = vpop.f32.mrf.mxu1 }
 0x651   :  { %v711_v63 = vadd.f32 %v710_v61, %v652_v52  ;;  %1660 = vtanh.f32 %v709_v58 }
 0x653   :  { %1662 = vtanh.f32 %v711_v63  ;;  %v818_v63 = vpop.permute.xlu1 %817 }
 0x654   :  { %1664 = vtanh.f32 %v705_v60 }
 0x655   :  { %1666 = vtanh.f32 %v697_v62 }
 0x656   :  { %1668 = vtanh.f32 %v699_v1 }
 0x657   :  { %1670 = vtanh.f32 %v695_v2 }
 0x658   :  { %v1657_v3 = vpop.eup %1656 }
 0x65c   :  { %v1659_v4 = vpop.eup %1658 }
 0x65e   :  { %v1661_v5 = vpop.eup %1660 }
 0x660   :  { %v1663_v9 = vpop.eup %1662 }
 0x661   :  { %v1665_v11 = vpop.eup %1664  ;;  %v724_v13 = vpack.c.bf16 %v1663_v9, %v1659_v4 }
 0x662   :  { %v1667_v16 = vpop.eup %1666  ;;  %v723_v17 = vpack.c.bf16 %v1661_v5, %v1665_v11 }
 0x663   :  { %v1669_v21 = vpop.eup %1668  ;;  %737 = vmatprep.subr.bf16.mxu0 %v724_v13  ;;  %v722_v22 = vpack.c.bf16 %v1657_v3, %v1667_v16 }
 0x664   :  { %738 = vmatpush1.bf16.msra.mxu0 %v723_v17  ;;  %v1671_v23 = vpop.eup %1670 }
 0x665   :  { %739 = vmatprep.subr.bf16.mxu0 %v722_v22  ;;  %v721_v25 = vpack.c.bf16 %v1669_v21, %v1671_v23 }
 0x668   :  { %740 = vmatpush1.bf16.msra.mxu0 %v721_v25 }
 0x66b   :  { %1550 = vmatmul.mubr.msk.bf16.vlgmr.msra.gmra.mxu0 %vm200_vm2, %v1972_v18 }
 0x66c   :  { %873 = vmatprep.mubr.bf16.mxu0 %v1775_v0 }
 0x72b   :  { %v759_v26 = vpop.f32.mrf.mxu0 }
 0x72c   :  { %v760_v27 = vadd.f32 %v759_v26, %v1977_v20 }
 0x72d   :  { %v761_v29 = vpop.f32.mrf.mxu0 }
 0x72e   :  { %v762_v30 = vadd.f32 %v761_v29, %v1977_v20  ;;  %v769_v33 = vmul.f32 %v768_v28, %v760_v27 }
 0x72f   :  { %v763_v32 = vpop.f32.mrf.mxu0 }
 0x730   :  { %v770_v34 = vmul.f32 %v768_v28, %v762_v30  ;;  %v949_v32 = vstv %s1560_s23 }
 0x731   :  { %v764_v36 = vpop.f32.mrf.mxu0 }
 0x732   :  { %v773_v38 = vcombine.low %v769_v33, %v770_v34  ;;  %v947_v36 = vstv %s1559_s24 }
 0x734   :  { %v775_v39 = vadd.f32 %v773_v38, %v767_v37 }
 0x736   :  { %v1551_v41 = vclamps-f32 %v775_v39, 1.0 }
 0x738   :  { %v778_v44 = vsub.f32 %v2032_v7, %v1551_v41 }
 0x73a   :  { %v780_v45 = vmul.f32 %v779_v42, %v778_v44 }
 0x73c   :  { %v781_v43 = vadd.f32 %v780_v45, %v2028_v46 }
 0x73e   :  { %v783_v12 = vmul.f32 %v782_v6, %v781_v43  ;;  %v962_v43 = vstv %s1554_s25 }
 0x740   :  { %v784_v8 = vadd.f32 %v783_v12, %v2010_v49 }
 0x742   :  { %v2055_v40 = vadd.f32 %v793_v51, %v784_v8  ;;  %v978_v8 = vstv %s1567_s26 }
 0x744   :  { %v809_v52 = vmul.f32 %v808_v15, %v2055_v40  ;;  %v948_v42 = vmul.f32 %v947_v36, %v2055_v40  ;;  %v1117_v36 = vstv %s1568_s27 }
 0x746   :  { %v811_v7 = vcombine.high %v809_v52, %v809_v52  ;;  %v813_v53 = vpack.c.bf16 %v809_v52, %v809_v52 }
 0x748   :  { %v814_v19 = vpack.c.bf16 %v811_v7, %v811_v7  ;;  %v836_v54 = vsel %vm123_vm0, %v813_v53, 0 }
 0x74a   :  { %1562 = vmatprep.subr.msk.bf16.mxu0 %vm123_vm0, %v814_v19 }
 0x74b   :  { %856 = vmatpush1.bf16.msra.mxu0 %v836_v54 }
 0x74e   :  { %1563 = vmatmul.mubr.msk.bf16.vlgmr.msra.gmra.mxu0 %vm116_vm1, %v1895_v35 }
 0x74f   :  { %883 = vmatprep.mubr.bf16.mxu0 %v1775_v0 }
 0x756   :  { %1564 = vmatmul.mubr.msk.bf16.gmra.mxu0 %vm116_vm1, %v1916_v47 }
 0x757   :  { %1108 = vmatprep.mubr.bf16.mxu0 %v1775_v0 }
 0x80e   :  { %v875_v49 = vpop.f32.mrf.mxu0 }
 0x80f   :  { %v876_v9 = vadd.f32 %v875_v49, %v818_v63 }
 0x810   :  { %v877_v46 = vpop.f32.mrf.mxu0 }
 0x811   :  { %v878_v3 = vadd.f32 %v877_v46, %v818_v63 }
 0x812   :  { %v879_v55 = vpop.f32.mrf.mxu0 }
 0x813   :  { %v880_v5 = vadd.f32 %v879_v55, %v823_v24 }
 0x814   :  { %v881_v56 = vpop.f32.mrf.mxu0 }
 0x815   :  { %v882_v58 = vadd.f32 %v881_v56, %v823_v24 }
 0x816   :  { %v885_v57 = vpop.f32.mrf.mxu0 }
 0x817   :  { %1672 = vtanh.f32 %v882_v58  ;;  %v886_v1 = vadd.f32 %v885_v57, %v828_v14 }
 0x818   :  { %v887_v59 = vpop.f32.mrf.mxu0 }
 0x819   :  { %v888_v60 = vadd.f32 %v887_v59, %v828_v14  ;;  %v998_v14 = vpop.permute.xlu1 %997 }
 0x81a   :  { %v889_v61 = vpop.f32.mrf.mxu0 }
 0x81b   :  { %v890_v62 = vadd.f32 %v889_v61, %v833_v10  ;;  %1674 = vtanh.f32 %v888_v60 }
 0x81c   :  { %v891_v2 = vpop.f32.mrf.mxu0 }
 0x81d   :  { %v892_v4 = vadd.f32 %v891_v2, %v833_v10  ;;  %1676 = vtanh.f32 %v890_v62  ;;  %v1003_v10 = vpop.permute.xlu0 %1002  ;;  %v988_v63 = vpop.permute.xlu1 %987 }
 0x81f   :  { %1678 = vtanh.f32 %v892_v4 }
 0x820   :  { %1680 = vtanh.f32 %v886_v1 }
 0x821   :  { %1682 = vtanh.f32 %v878_v3  ;;  %v993_v24 = vpop.permute.xlu0 %992 }
 0x822   :  { %1684 = vtanh.f32 %v880_v5 }
 0x823   :  { %1686 = vtanh.f32 %v876_v9 }
 0x824   :  { %v1673_v11 = vpop.eup %1672 }
 0x828   :  { %v1675_v13 = vpop.eup %1674 }
 0x82a   :  { %v1677_v16 = vpop.eup %1676 }
 0x82c   :  { %v1679_v17 = vpop.eup %1678 }
 0x82d   :  { %v1681_v21 = vpop.eup %1680  ;;  %v905_v22 = vpack.c.bf16 %v1679_v17, %v1675_v13 }
 0x82e   :  { %v1683_v23 = vpop.eup %1682  ;;  %v904_v25 = vpack.c.bf16 %v1677_v16, %v1681_v21 }
 0x82f   :  { %v1685_v26 = vpop.eup %1684  ;;  %918 = vmatprep.subr.bf16.mxu1 %v905_v22  ;;  %v903_v27 = vpack.c.bf16 %v1673_v11, %v1683_v23 }
 0x830   :  { %919 = vmatpush1.bf16.msra.mxu1 %v904_v25  ;;  %v1687_v28 = vpop.eup %1686 }
 0x831   :  { %920 = vmatprep.subr.bf16.mxu1 %v903_v27  ;;  %v902_v29 = vpack.c.bf16 %v1685_v26, %v1687_v28 }
 0x834   :  { %921 = vmatpush1.bf16.msra.mxu1 %v902_v29 }
 0x837   :  { %1565 = vmatmul.mubr.msk.bf16.vlgmr.msra.gmra.mxu1 %vm200_vm2, %v1972_v18 }
 0x838   :  { %1043 = vmatprep.mubr.bf16.mxu1 %v1775_v0 }
 0x8f7   :  { %v940_v30 = vpop.f32.mrf.mxu1 }
 0x8f8   :  { %v941_v31 = vadd.f32 %v940_v30, %v1977_v20 }
 0x8f9   :  { %v942_v33 = vpop.f32.mrf.mxu1 }
 0x8fa   :  { %v943_v34 = vadd.f32 %v942_v33, %v1977_v20  ;;  %v950_v38 = vmul.f32 %v949_v32, %v941_v31 }
 0x8fb   :  { %v944_v37 = vpop.f32.mrf.mxu1 }
 0x8fc   :  { %v951_v39 = vmul.f32 %v949_v32, %v943_v34  ;;  %v1119_v32 = vstv %s1569_s6 }
 0x8fd   :  { %v945_v41 = vpop.f32.mrf.mxu1 }
 0x8fe   :  { %v954_v44 = vcombine.low %v950_v38, %v951_v39 }
 0x900   :  { %v956_v45 = vadd.f32 %v954_v44, %v948_v42 }
 0x902   :  { %v1566_v6 = vclamps-f32 %v956_v45, 1.0 }
 0x904   :  { %v959_v50 = vsub.f32 %v2055_v40, %v1566_v6 }
 0x906   :  { %v2073_v12 = vmul.f32 %v960_v48, %v959_v50  ;;  %v1130_v48 = vstv %s1555_s28 }
 0x908   :  { %v963_v51 = vmul.f32 %v962_v43, %v2073_v12 }
 0x90a   :  { %v2077_v15 = vadd.f32 %v963_v51, %v2055_v40  ;;  %v1133_v51 = vstv %s1556_s29 }
 0x90c   :  { %v979_v52 = vmul.f32 %v978_v8, %v2077_v15  ;;  %v1118_v42 = vmul.f32 %v1117_v36, %v2077_v15  ;;  %v1581_v8 = vld [vmem:[%s2145_s2 + $0x18] sm:$0xff]  ;;  %s1584_s2 = sld [smem:[#allocation2 + $0x383]] }
 0x90e   :  { %v981_v7 = vcombine.high %v979_v52, %v979_v52  ;;  %v983_v53 = vpack.c.bf16 %v979_v52, %v979_v52  ;;  %v1143_v52 = vstv %s1576_s30 }
 0x910   :  { %v984_v19 = vpack.c.bf16 %v981_v7, %v981_v7  ;;  %v1006_v54 = vsel %vm123_vm0, %v983_v53, 0 }
 0x912   :  { %1571 = vmatprep.subr.msk.bf16.mxu1 %vm123_vm0, %v984_v19  ;;  %v1144_v19 = vmul.f32 %v1581_v8, %v1143_v52  ;;  %v1311_v8 = vstv %s1577_s12 }
 0x913   :  { %1026 = vmatpush1.bf16.msra.mxu1 %v1006_v54 }
 0x916   :  { %1572 = vmatmul.mubr.msk.bf16.vlgmr.msra.gmra.mxu1 %vm116_vm1, %v1895_v35 }
 0x917   :  { %1053 = vmatprep.mubr.bf16.mxu1 %v1775_v0 }
 0x91e   :  { %1573 = vmatmul.mubr.msk.bf16.gmra.mxu1 %vm116_vm1, %v1916_v47 }
 0x91f   :  { %1289 = vmatprep.mubr.bf16.mxu1 %v1775_v0 }
 0x9d6   :  { %v1045_v49 = vpop.f32.mrf.mxu1 }
 0x9d7   :  { %v1046_v9 = vadd.f32 %v1045_v49, %v988_v63  ;;  %v1159_v49 = vstv %s1582_s5 }
 0x9d8   :  { %v1047_v46 = vpop.f32.mrf.mxu1 }
 0x9d9   :  { %v1048_v3 = vadd.f32 %v1047_v46, %v988_v63 }
 0x9da   :  { %v1049_v55 = vpop.f32.mrf.mxu1 }
 0x9db   :  { %v1050_v5 = vadd.f32 %v1049_v55, %v993_v24 }
 0x9dc   :  { %v1051_v56 = vpop.f32.mrf.mxu1 }
 0x9dd   :  { %v1052_v58 = vadd.f32 %v1051_v56, %v993_v24 }
 0x9de   :  { %v1055_v57 = vpop.f32.mrf.mxu1 }
 0x9df   :  { %1688 = vtanh.f32 %v1052_v58  ;;  %v1056_v1 = vadd.f32 %v1055_v57, %v998_v14  ;;  %v1184_v57 = vpop.permute.xlu0 %1183 }
 0x9e0   :  { %v1057_v59 = vpop.f32.mrf.mxu1 }
 0x9e1   :  { %v1058_v60 = vadd.f32 %v1057_v59, %v998_v14  ;;  %v1179_v59 = vpop.permute.xlu1 %1178 }
 0x9e2   :  { %v1059_v61 = vpop.f32.mrf.mxu1 }
 0x9e3   :  { %v1060_v62 = vadd.f32 %v1059_v61, %v1003_v10  ;;  %1690 = vtanh.f32 %v1058_v60  ;;  %v1174_v61 = vpop.permute.xlu0 %1173 }
 0x9e4   :  { %v1061_v2 = vpop.f32.mrf.mxu1 }
 0x9e5   :  { %v1062_v4 = vadd.f32 %v1061_v2, %v1003_v10  ;;  %1692 = vtanh.f32 %v1060_v62 }
 0x9e7   :  { %1694 = vtanh.f32 %v1062_v4  ;;  %v1169_v4 = vpop.permute.xlu1 %1168 }
 0x9e8   :  { %1696 = vtanh.f32 %v1056_v1 }
 0x9e9   :  { %1698 = vtanh.f32 %v1048_v3 }
 0x9ea   :  { %1700 = vtanh.f32 %v1050_v5 }
 0x9eb   :  { %1702 = vtanh.f32 %v1046_v9 }
 0x9ec   :  { %v1689_v11 = vpop.eup %1688 }
 0x9f0   :  { %v1691_v13 = vpop.eup %1690 }
 0x9f2   :  { %v1693_v16 = vpop.eup %1692 }
 0x9f4   :  { %v1695_v17 = vpop.eup %1694 }
 0x9f5   :  { %v1697_v21 = vpop.eup %1696  ;;  %v1075_v22 = vpack.c.bf16 %v1695_v17, %v1691_v13 }
 0x9f6   :  { %v1699_v23 = vpop.eup %1698  ;;  %v1074_v25 = vpack.c.bf16 %v1693_v16, %v1697_v21 }
 0x9f7   :  { %v1701_v26 = vpop.eup %1700  ;;  %1088 = vmatprep.subr.bf16.mxu0 %v1075_v22  ;;  %v1073_v27 = vpack.c.bf16 %v1689_v11, %v1699_v23 }
 0x9f8   :  { %1089 = vmatpush1.bf16.msra.mxu0 %v1074_v25  ;;  %v1703_v28 = vpop.eup %1702 }
 0x9f9   :  { %1090 = vmatprep.subr.bf16.mxu0 %v1073_v27  ;;  %v1072_v29 = vpack.c.bf16 %v1701_v26, %v1703_v28 }
 0x9fc   :  { %1091 = vmatpush1.bf16.msra.mxu0 %v1072_v29 }
 0x9ff   :  { %1574 = vmatmul.mubr.msk.bf16.vlgmr.msra.gmra.mxu0 %vm200_vm2, %v1972_v18 }
 0xa00   :  { %1224 = vmatprep.mubr.bf16.mxu0 %v1775_v0 }
 0xabf   :  { %v1110_v30 = vpop.f32.mrf.mxu0 }
 0xac0   :  { %v1111_v31 = vadd.f32 %v1110_v30, %v1977_v20 }
 0xac1   :  { %v1112_v33 = vpop.f32.mrf.mxu0 }
 0xac2   :  { %v1113_v34 = vadd.f32 %v1112_v33, %v1977_v20  ;;  %v1120_v38 = vmul.f32 %v1119_v32, %v1111_v31 }
 0xac3   :  { %v1114_v37 = vpop.f32.mrf.mxu0 }
 0xac4   :  { %v1121_v39 = vmul.f32 %v1119_v32, %v1113_v34  ;;  %v1300_v37 = vstv %s1584_s2 }
 0xac5   :  { %v1115_v41 = vpop.f32.mrf.mxu0 }
 0xac6   :  { %v1124_v44 = vcombine.low %v1120_v38, %v1121_v39  ;;  %v1298_v41 = vstv %s1583_s11 }
 0xac8   :  { %v1126_v45 = vadd.f32 %v1124_v44, %v1118_v42 }
 0xaca   :  { %v1575_v6 = vclamps-f32 %v1126_v45, 1.0 }
 0xacc   :  { %v1129_v50 = vsub.f32 %v2077_v15, %v1575_v6 }
 0xace   :  { %v1131_v43 = vmul.f32 %v1130_v48, %v1129_v50 }
 0xad0   :  { %v1132_v7 = vadd.f32 %v1131_v43, %v2073_v12 }
 0xad2   :  { %v1134_v53 = vmul.f32 %v1133_v51, %v1132_v7  ;;  %v1313_v7 = vstv %s1578_s13 }
 0xad4   :  { %v1135_v54 = vadd.f32 %v1134_v53, %v2055_v40 }
 0xad6   :  { %v2100_v46 = vadd.f32 %v1144_v19, %v1135_v54  ;;  %v1329_v54 = vstv %s1591_s0 }
 0xad8   :  { %v1160_v10 = vmul.f32 %v1159_v49, %v2100_v46  ;;  %v1299_v48 = vmul.f32 %v1298_v41, %v2100_v46 }
 0xada   :  { %v1162_v15 = vcombine.high %v1160_v10, %v1160_v10  ;;  %v1164_v55 = vpack.c.bf16 %v1160_v10, %v1160_v10 }
 0xadc   :  { %v1165_v56 = vpack.c.bf16 %v1162_v15, %v1162_v15  ;;  %v1187_v14 = vsel %vm123_vm0, %v1164_v55, 0 }
 0xade   :  { %1586 = vmatprep.subr.msk.bf16.mxu0 %vm123_vm0, %v1165_v56 }
 0xadf   :  { %1207 = vmatpush1.bf16.msra.mxu0 %v1187_v14 }
 0xae2   :  { %1587 = vmatmul.mubr.msk.bf16.vlgmr.msra.gmra.mxu0 %vm116_vm1, %v1895_v35 }
 0xae3   :  { %1234 = vmatprep.mubr.bf16.mxu0 %v1775_v0 }
 0xaea   :  { %1588 = vmatmul.mubr.msk.bf16.gmra.mxu0 %vm116_vm1, %v1916_v47 }
 0xaeb   :  { %1459 = vmatprep.mubr.bf16.mxu0 %v1775_v0 }
 0xba2   :  { %v1226_v40 = vpop.f32.mrf.mxu0 }
 0xba3   :  { %v1227_v17 = vadd.f32 %v1226_v40, %v1169_v4 }
 0xba4   :  { %v1228_v12 = vpop.f32.mrf.mxu0 }
 0xba5   :  { %v1229_v11 = vadd.f32 %v1228_v12, %v1169_v4 }
 0xba6   :  { %v1230_v24 = vpop.f32.mrf.mxu0 }
 0xba7   :  { %v1231_v16 = vadd.f32 %v1230_v24, %v1174_v61 }
 0xba8   :  { %v1232_v58 = vpop.f32.mrf.mxu0 }
 0xba9   :  { %v1233_v62 = vadd.f32 %v1232_v58, %v1174_v61 }
 0xbaa   :  { %v1236_v60 = vpop.f32.mrf.mxu0 }
 0xbab   :  { %1704 = vtanh.f32 %v1233_v62  ;;  %v1237_v5 = vadd.f32 %v1236_v60, %v1179_v59 }
 0xbac   :  { %v1238_v63 = vpop.f32.mrf.mxu0 }
 0xbad   :  { %v1239_v1 = vadd.f32 %v1238_v63, %v1179_v59  ;;  %v1349_v59 = vpop.permute.xlu1 %1348 }
 0xbae   :  { %v1240_v2 = vpop.f32.mrf.mxu0 }
 0xbaf   :  { %v1241_v3 = vadd.f32 %v1240_v2, %v1184_v57  ;;  %1706 = vtanh.f32 %v1239_v1 }
 0xbb0   :  { %v1242_v9 = vpop.f32.mrf.mxu0 }
 0xbb1   :  { %v1243_v13 = vadd.f32 %v1242_v9, %v1184_v57  ;;  %1708 = vtanh.f32 %v1241_v3  ;;  %v1354_v57 = vpop.permute.xlu0 %1353  ;;  %v1339_v4 = vpop.permute.xlu1 %1338 }
 0xbb3   :  { %1710 = vtanh.f32 %v1243_v13 }
 0xbb4   :  { %1712 = vtanh.f32 %v1237_v5 }
 0xbb5   :  { %1714 = vtanh.f32 %v1229_v11  ;;  %v1344_v61 = vpop.permute.xlu0 %1343 }
 0xbb6   :  { %1716 = vtanh.f32 %v1231_v16 }
 0xbb7   :  { %1718 = vtanh.f32 %v1227_v17 }
 0xbb8   :  { %v1705_v21 = vpop.eup %1704 }
 0xbbc   :  { %v1707_v22 = vpop.eup %1706 }
 0xbbe   :  { %v1709_v23 = vpop.eup %1708 }
 0xbc0   :  { %v1711_v25 = vpop.eup %1710 }
 0xbc1   :  { %v1713_v26 = vpop.eup %1712  ;;  %v1256_v27 = vpack.c.bf16 %v1711_v25, %v1707_v22 }
 0xbc2   :  { %v1715_v28 = vpop.eup %1714  ;;  %v1255_v29 = vpack.c.bf16 %v1709_v23, %v1713_v26 }
 0xbc3   :  { %v1717_v30 = vpop.eup %1716  ;;  %1269 = vmatprep.subr.bf16.mxu1 %v1256_v27  ;;  %v1254_v31 = vpack.c.bf16 %v1705_v21, %v1715_v28 }
 0xbc4   :  { %1270 = vmatpush1.bf16.msra.mxu1 %v1255_v29  ;;  %v1719_v32 = vpop.eup %1718 }
 0xbc5   :  { %1271 = vmatprep.subr.bf16.mxu1 %v1254_v31  ;;  %v1253_v33 = vpack.c.bf16 %v1717_v30, %v1719_v32 }
 0xbc8   :  { %1272 = vmatpush1.bf16.msra.mxu1 %v1253_v33  ;;  %v1470_v33 = vstv %s1593_s14 }
 0xbcb   :  { %1589 = vmatmul.mubr.msk.bf16.vlgmr.msra.gmra.mxu1 %vm200_vm2, %v1972_v18 }
 0xbcc   :  { %1394 = vmatprep.mubr.bf16.mxu1 %v1775_v0 }
 0xc8b   :  { %v1291_v34 = vpop.f32.mrf.mxu1 }
 0xc8c   :  { %v1292_v36 = vadd.f32 %v1291_v34, %v1977_v20 }
 0xc8d   :  { %v1293_v38 = vpop.f32.mrf.mxu1 }
 0xc8e   :  { %v1294_v39 = vadd.f32 %v1293_v38, %v1977_v20  ;;  %v1301_v44 = vmul.f32 %v1300_v37, %v1292_v36 }
 0xc8f   :  { %v1295_v42 = vpop.f32.mrf.mxu1 }
 0xc90   :  { %v1302_v45 = vmul.f32 %v1300_v37, %v1294_v39  ;;  %v1468_v37 = vstv %s1592_s15 }
 0xc91   :  { %v1296_v6 = vpop.f32.mrf.mxu1 }
 0xc92   :  { %v1305_v50 = vcombine.low %v1301_v44, %v1302_v45 }
 0xc94   :  { %v1307_v43 = vadd.f32 %v1305_v50, %v1299_v48  ;;  %v1481_v48 = vstv %s1579_s4 }
 0xc96   :  { %v1590_v51 = vclamps-f32 %v1307_v43, 1.0 }
 0xc98   :  { %v1310_v52 = vsub.f32 %v2100_v46, %v1590_v51  ;;  %v1484_v51 = vstv %s1580_s16 }
 0xc9a   :  { %v2118_v53 = vmul.f32 %v1311_v8, %v1310_v52 }
 0xc9c   :  { %v1314_v19 = vmul.f32 %v1313_v7, %v2118_v53 }
 0xc9e   :  { %v2122_v49 = vadd.f32 %v1314_v19, %v2100_v46 }
 0xca0   :  { %v1330_v10 = vmul.f32 %v1329_v54, %v2122_v49  ;;  %v1469_v44 = vmul.f32 %v1468_v37, %v2122_v49 }
 0xca2   :  { %v1332_v15 = vcombine.high %v1330_v10, %v1330_v10  ;;  %v1334_v55 = vpack.c.bf16 %v1330_v10, %v1330_v10 }
 0xca4   :  { %v1335_v56 = vpack.c.bf16 %v1332_v15, %v1332_v15  ;;  %v1357_v14 = vsel %vm123_vm0, %v1334_v55, 0 }
 0xca6   :  { %1595 = vmatprep.subr.msk.bf16.mxu1 %vm123_vm0, %v1335_v56 }
 0xca7   :  { %1377 = vmatpush1.bf16.msra.mxu1 %v1357_v14 }
 0xcaa   :  { %1596 = vmatmul.mubr.msk.bf16.vlgmr.msra.gmra.mxu1 %vm116_vm1, %v1895_v35 }
 0xcab   :  { %1404 = vmatprep.mubr.bf16.mxu1 %v1775_v0 }
 0xcb2   :  { %1597 = vmatmul.mubr.msk.bf16.gmra.mxu1 %vm116_vm1, %v1916_v47 }
 0xd6a   :  { %v1396_v40 = vpop.f32.mrf.mxu1 }
 0xd6b   :  { %v1397_v11 = vadd.f32 %v1396_v40, %v1339_v4 }
 0xd6c   :  { %v1398_v12 = vpop.f32.mrf.mxu1 }
 0xd6d   :  { %v1399_v5 = vadd.f32 %v1398_v12, %v1339_v4 }
 0xd6e   :  { %v1400_v24 = vpop.f32.mrf.mxu1 }
 0xd6f   :  { %v1401_v9 = vadd.f32 %v1400_v24, %v1344_v61 }
 0xd70   :  { %v1402_v58 = vpop.f32.mrf.mxu1 }
 0xd71   :  { %v1403_v62 = vadd.f32 %v1402_v58, %v1344_v61 }
 0xd72   :  { %v1406_v60 = vpop.f32.mrf.mxu1 }
 0xd73   :  { %1720 = vtanh.f32 %v1403_v62  ;;  %v1407_v35 = vadd.f32 %v1406_v60, %v1349_v59 }
 0xd74   :  { %v1408_v63 = vpop.f32.mrf.mxu1 }
 0xd75   :  { %v1409_v1 = vadd.f32 %v1408_v63, %v1349_v59 }
 0xd76   :  { %v1410_v2 = vpop.f32.mrf.mxu1 }
 0xd77   :  { %v1411_v3 = vadd.f32 %v1410_v2, %v1354_v57  ;;  %1722 = vtanh.f32 %v1409_v1 }
 0xd78   :  { %v1412_v0 = vpop.f32.mrf.mxu1 }
 0xd79   :  { %v1413_v47 = vadd.f32 %v1412_v0, %v1354_v57  ;;  %1724 = vtanh.f32 %v1411_v3 }
 0xd7b   :  { %1726 = vtanh.f32 %v1413_v47 }
 0xd7c   :  { %1728 = vtanh.f32 %v1407_v35 }
 0xd7d   :  { %1730 = vtanh.f32 %v1399_v5 }
 0xd7e   :  { %1732 = vtanh.f32 %v1401_v9 }
 0xd7f   :  { %1734 = vtanh.f32 %v1397_v11 }
 0xd80   :  { %v1721_v13 = vpop.eup %1720 }
 0xd84   :  { %v1723_v16 = vpop.eup %1722 }
 0xd86   :  { %v1725_v17 = vpop.eup %1724 }
 0xd88   :  { %v1727_v21 = vpop.eup %1726 }
 0xd89   :  { %v1729_v22 = vpop.eup %1728  ;;  %v1426_v23 = vpack.c.bf16 %v1727_v21, %v1723_v16 }
 0xd8a   :  { %v1731_v25 = vpop.eup %1730  ;;  %v1425_v26 = vpack.c.bf16 %v1725_v17, %v1729_v22 }
 0xd8b   :  { %v1733_v27 = vpop.eup %1732  ;;  %1439 = vmatprep.subr.bf16.mxu0 %v1426_v23  ;;  %v1424_v28 = vpack.c.bf16 %v1721_v13, %v1731_v25 }
 0xd8c   :  { %1440 = vmatpush1.bf16.msra.mxu0 %v1425_v26  ;;  %v1735_v29 = vpop.eup %1734 }
 0xd8d   :  { %1441 = vmatprep.subr.bf16.mxu0 %v1424_v28  ;;  %v1423_v30 = vpack.c.bf16 %v1733_v27, %v1735_v29 }
 0xd90   :  { %1442 = vmatpush1.bf16.msra.mxu0 %v1423_v30 }
 0xd93   :  { %1598 = vmatmul.mubr.msk.bf16.vlgmr.msra.gmra.mxu0 %vm200_vm2, %v1972_v18 }
 0xe53   :  { %v1461_v31 = vpop.f32.mrf.mxu0 }
 0xe54   :  { %v1462_v32 = vadd.f32 %v1461_v31, %v1977_v20 }
 0xe55   :  { %v1463_v34 = vpop.f32.mrf.mxu0 }
 0xe56   :  { %v1464_v36 = vadd.f32 %v1463_v34, %v1977_v20  ;;  %v1471_v39 = vmul.f32 %v1470_v33, %v1462_v32 }
 0xe57   :  { %v1465_v38 = vpop.f32.mrf.mxu0 }
 0xe58   :  { %v1472_v41 = vmul.f32 %v1470_v33, %v1464_v36 }
 0xe59   :  { %v1466_v42 = vpop.f32.mrf.mxu0 }
 0xe5a   :  { %v1475_v45 = vcombine.low %v1471_v39, %v1472_v41 }
 0xe5c   :  { %v1477_v18 = vadd.f32 %v1475_v45, %v1469_v44 }
 0xe5e   :  { %v1599_v6 = vclamps-f32 %v1477_v18, 1.0 }
 0xe60   :  { %v1480_v50 = vsub.f32 %v2122_v49, %v1599_v6 }
 0xe62   :  { %v1482_v43 = vmul.f32 %v1481_v48, %v1480_v50 }
 0xe64   :  { %v1483_v8 = vadd.f32 %v1482_v43, %v2118_v53 }
 0xe66   :  { %v1485_v20 = vmul.f32 %v1484_v51, %v1483_v8 }
 0xe68   :  { %v1486_v52 = vadd.f32 %v1485_v20, %v2100_v46 }
 0xe6a   :  { %v1600_v7 = vclamps-f32 %v1486_v52, 1.0 }
 0xe6c   :  { %1489 = vst [vmem:[#allocation5] sm:$0xff] %v1600_v7 }
 0xe6d   :  { %1759 = shalt.err (!%p1756_p9)
}
 0xe6e   :  { %1499 = dma.vmem_to_hbm [thread:$0]  %s1497_s18, 128, %s2151_s8, [#allocation3]  }
 0xe6f   :  { %1770 = dma.done.wait [#allocation3], 128  }
 0xe70   :  { %1771 = vsyncadd [#allocation3], 4294967168 }
 0xe71   :  { %1503 = vsyncpa [#allocation3], 1 }
 0xe72   :  { %1504 = vsyncpa [#allocation4], 1 }

</bundles_post_ra>
